<compile_context>
chip_gen: v6e
topology: v6e:2x2x1
jax: 0.10.0
libtpu: 0.0.40
codegen_flags: <defaults>
</compile_context>

<pallas_src>
import functools

import jax
import jax.numpy as jnp
from jax import lax
from jax.experimental import pallas as pl
from jax.experimental.pallas import tpu as pltpu


_VMEM_LIMIT = 32 * 1024 * 1024   # safe on v5e/v6e (128 MiB) and v7x (64 MiB physical)


# ----------------------------------------------------------------------------------
# small helpers
# ----------------------------------------------------------------------------------
def _round_up(v, m):
    return ((v + m - 1) // m) * m


def _m_tiling(M, max_tm=512, align=16):
    """Pick (tile_m, padded_M).  Prefer >= 2 tiles for large M (v7x dual TC)."""
    Ma = _round_up(M, align)
    if Ma > max_tm:
        return max_tm, _round_up(M, max_tm)
    if Ma >= 128:
        tm = _round_up((Ma + 1) // 2, align)
        return tm, 2 * tm
    return Ma, Ma


# ----------------------------------------------------------------------------------
# Pallas kernels
# ----------------------------------------------------------------------------------
def _conv_lrelu_kernel(x_ref, w_ref, o_ref, *, negslope):
    """One M-tile of an im2col GEMM with fused LeakyReLU (conv1)."""
    y = jnp.dot(x_ref[...], w_ref[...], preferred_element_type=jnp.float32)
    o_ref[...] = jnp.where(y >= 0.0, y, y * negslope).astype(o_ref.dtype)


def _conv_stats_kernel(x_ref, w_ref, o_ref, sum_ref, sq_ref):
    """One M-tile of an im2col GEMM with per-channel sum / sum-of-squares fused into
    the epilogue (accumulated across the arbitrary M grid axis).  Padded rows of the
    patches are zero so they contribute nothing to the statistics."""
    @pl.when(pl.program_id(0) == 0)
    def _():
        sum_ref[...] = jnp.zeros_like(sum_ref)
        sq_ref[...] = jnp.zeros_like(sq_ref)

    c = jnp.dot(x_ref[...], w_ref[...], preferred_element_type=jnp.float32)
    o_ref[...] = c.astype(o_ref.dtype)
    sum_ref[...] += jnp.sum(c, axis=0, keepdims=True)
    sq_ref[...] += jnp.sum(c * c, axis=0, keepdims=True)


def _bn_apply_lrelu_kernel(x_ref, sum_ref, sq_ref, g_ref, b_ref, o_ref, *,
                           n_valid, negslope, eps):
    """Apply training-mode BatchNorm (from precomputed sums) + LeakyReLU, per M tile."""
    inv_n = 1.0 / float(n_valid)
    mean = sum_ref[...] * inv_n
    var = sq_ref[...] * inv_n - mean * mean          # biased variance (PyTorch BN)
    scale = g_ref[...] * lax.rsqrt(var + eps)
    shift = b_ref[...] - mean * scale
    y = x_ref[...].astype(jnp.float32) * scale + shift
    o_ref[...] = jnp.where(y >= 0.0, y, y * negslope).astype(o_ref.dtype)


def _tail_kernel(p_ref, w3_ref, g_ref, b_ref, w4_ref, sel_ref, o_ref, *,
                 n_valid, negslope, eps):
    """Fused conv3 + BatchNorm(256) + LeakyReLU + conv4 for the tiny 3x3 tail.

    p_ref   : (Mp, K3)  bf16 im2col patches for conv3 (rows >= n_valid are zero pad)
    w3_ref  : (K3, C3)  bf16 conv3 GEMM weight
    g_ref/b_ref : (1, C3) f32 BN affine params
    w4_ref  : (Mp, C3)  f32 conv4 weight replicated per row (zero on pad rows)
    sel_ref : (Nout, Mp) f32 selection matrix summing the 9 rows of each image
    o_ref   : (Nout, 1) f32 scalar score per image (pad rows unused)
    """
    c = jnp.dot(p_ref[...], w3_ref[...], preferred_element_type=jnp.float32)
    row = lax.broadcasted_iota(jnp.int32, c.shape, 0)
    mask = (row < n_valid).astype(jnp.float32)
    inv_n = 1.0 / float(n_valid)
    mean = jnp.sum(c * mask, axis=0, keepdims=True) * inv_n
    diff = (c - mean) * mask
    var = jnp.sum(diff * diff, axis=0, keepdims=True) * inv_n
    scale = g_ref[...] * lax.rsqrt(var + eps)
    shift = b_ref[...] - mean * scale
    y = c * scale + shift
    y = jnp.where(y >= 0.0, y, y * negslope)
    # conv4: 3x3 valid conv of a 3x3 map == per-image contraction over (kh,kw,cin)
    z = y * w4_ref[...]                                                # (Mp, C3)
    t = jnp.dot(sel_ref[...], z, preferred_element_type=jnp.float32)   # (Nout, C3)
    o_ref[...] = jnp.sum(t, axis=1, keepdims=True)                     # (Nout, 1)


# ----------------------------------------------------------------------------------
# Wrappers (padding, BlockSpecs, im2col)
# ----------------------------------------------------------------------------------
def conv_lrelu(patches, w, *, negslope=0.2):
    """patches (M, K) bf16 @ w (K, C) bf16 -> (M, C) bf16 with fused LeakyReLU."""
    M, K = patches.shape
    _, C = w.shape
    tm, Mp = _m_tiling(M)
    if Mp != M:
        patches = jnp.pad(patches, ((0, Mp - M), (0, 0)))
    out = pl.pallas_call(
        functools.partial(_conv_lrelu_kernel, negslope=negslope),
        out_shape=jax.ShapeDtypeStruct((Mp, C), jnp.bfloat16),
        grid=(Mp // tm,),
        in_specs=[
            pl.BlockSpec((tm, K), lambda i: (i, 0)),
            pl.BlockSpec((K, C), lambda i: (0, 0)),
        ],
        out_specs=pl.BlockSpec((tm, C), lambda i: (i, 0)),
        compiler_params=pltpu.CompilerParams(
            dimension_semantics=("parallel",),
            vmem_limit_bytes=_VMEM_LIMIT),
    )(patches, w)
    return out[:M] if Mp != M else out


def conv_bn_stats(patches, w):
    """conv GEMM (bf16 in, bf16 out) + per-channel sum/sumsq over the real rows."""
    M, K = patches.shape
    _, C = w.shape
    tm, Mp = _m_tiling(M)
    if Mp != M:
        patches = jnp.pad(patches, ((0, Mp - M), (0, 0)))
    out, s, sq = pl.pallas_call(
        _conv_stats_kernel,
        out_shape=(jax.ShapeDtypeStruct((Mp, C), jnp.bfloat16),
                   jax.ShapeDtypeStruct((1, C), jnp.float32),
                   jax.ShapeDtypeStruct((1, C), jnp.float32)),
        grid=(Mp // tm,),
        in_specs=[
            pl.BlockSpec((tm, K), lambda i: (i, 0)),
            pl.BlockSpec((K, C), lambda i: (0, 0)),
        ],
        out_specs=(pl.BlockSpec((tm, C), lambda i: (i, 0)),
                   pl.BlockSpec((1, C), lambda i: (0, 0)),
                   pl.BlockSpec((1, C), lambda i: (0, 0))),
        compiler_params=pltpu.CompilerParams(
            dimension_semantics=("arbitrary",),   # stats accumulate across M tiles
            vmem_limit_bytes=_VMEM_LIMIT),
    )(patches, w)
    return out, s, sq          # out is still M-padded; caller slices after BN apply


def bn_apply_lrelu(x_padded, n_valid, s, sq, gamma, beta, *, negslope=0.2, eps=1e-5):
    """x_padded (Mp, C) bf16 -> BN(+affine)+LeakyReLU -> (n_valid, C) bf16, M-tiled."""
    Mp, C = x_padded.shape
    tm, Mp2 = _m_tiling(n_valid)
    assert Mp2 == Mp, (Mp2, Mp)
    out = pl.pallas_call(
        functools.partial(_bn_apply_lrelu_kernel, n_valid=n_valid,
                          negslope=negslope, eps=eps),
        out_shape=jax.ShapeDtypeStruct((Mp, C), jnp.bfloat16),
        grid=(Mp // tm,),
        in_specs=[
            pl.BlockSpec((tm, C), lambda i: (i, 0)),
            pl.BlockSpec((1, C), lambda i: (0, 0)),
            pl.BlockSpec((1, C), lambda i: (0, 0)),
            pl.BlockSpec((1, C), lambda i: (0, 0)),
            pl.BlockSpec((1, C), lambda i: (0, 0)),
        ],
        out_specs=pl.BlockSpec((tm, C), lambda i: (i, 0)),
        compiler_params=pltpu.CompilerParams(
            dimension_semantics=("parallel",),
            vmem_limit_bytes=_VMEM_LIMIT),
    )(x_padded, s, sq, gamma, beta)
    return out[:n_valid]


def conv_bn_lrelu_conv_tail(patches, w3, gamma3, beta3, w4_rows, n_img,
                            *, negslope=0.2, eps=1e-5):
    """Fused conv3 + BN + LeakyReLU + conv4.  patches: (n_img*9, K3) bf16."""
    M, K3 = patches.shape
    _, C3 = w3.shape
    Mp = _round_up(M, 16)
    Nout = _round_up(n_img, 8)
    if Mp != M:
        patches = jnp.pad(patches, ((0, Mp - M), (0, 0)))
    # conv4 weight replicated once per image row, zero rows for padding
    w4_full = jnp.concatenate(
        [jnp.tile(w4_rows, (n_img, 1)), jnp.zeros((Mp - M, C3), jnp.float32)], axis=0)
    # per-image row-selection matrix (sums the 9 spatial rows of each image)
    groups = jnp.arange(Mp) // 9
    sel = (groups[None, :] == jnp.arange(Nout)[:, None]).astype(jnp.float32)

    out = pl.pallas_call(
        functools.partial(_tail_kernel, n_valid=M, negslope=negslope, eps=eps),
        out_shape=jax.ShapeDtypeStruct((Nout, 1), jnp.float32),
        grid=(1,),
        in_specs=[
            pl.BlockSpec((Mp, K3), lambda i: (0, 0)),
            pl.BlockSpec((K3, C3), lambda i: (0, 0)),
            pl.BlockSpec((1, C3), lambda i: (0, 0)),
            pl.BlockSpec((1, C3), lambda i: (0, 0)),
            pl.BlockSpec((Mp, C3), lambda i: (0, 0)),
            pl.BlockSpec((Nout, Mp), lambda i: (0, 0)),
        ],
        out_specs=pl.BlockSpec((Nout, 1), lambda i: (0, 0)),
        compiler_params=pltpu.CompilerParams(
            dimension_semantics=("arbitrary",),
            vmem_limit_bytes=_VMEM_LIMIT),
    )(patches, w3, gamma3, beta3, w4_full, sel)
    return out[:n_img, 0]


def im2col(x, kh, kw, stride, pad):
    """x: NHWC.  Returns (N*OH*OW, KH*KW*Cin) patches (same dtype as x)."""
    if pad:
        x = jnp.pad(x, ((0, 0), (pad, pad), (pad, pad), (0, 0)))
    N, H, W, C = x.shape
    oh = (H - kh) // stride + 1
    ow = (W - kw) // stride + 1
    cols = []
    for i in range(kh):
        for j in range(kw):
            cols.append(
                x[:, i:i + (oh - 1) * stride + 1:stride,
                     j:j + (ow - 1) * stride + 1:stride, :])
    p = jnp.stack(cols, axis=3)                       # (N, oh, ow, kh*kw, C)
    return p.reshape(N * oh * ow, kh * kw * C), (N, oh, ow)


def reshape_torch_weight(w):
    """PyTorch conv weight (Cout, Cin, KH, KW) -> GEMM weight (KH*KW*Cin, Cout)."""
    co, ci, kh, kw = w.shape
    return jnp.transpose(w, (2, 3, 1, 0)).reshape(kh * kw * ci, co)


def prepare_params(params):
    """One-time conversion of PyTorch-layout params to kernel (GEMM/bf16) layout."""
    c3 = params["w3"].shape[0]                                    # 256
    w4g = reshape_torch_weight(params["w4"]).astype(jnp.float32)  # (9*256, 1)
    return {
        "w1": reshape_torch_weight(params["w1"]).astype(jnp.bfloat16),
        "w2": reshape_torch_weight(params["w2"]).astype(jnp.bfloat16),
        "w3": reshape_torch_weight(params["w3"]).astype(jnp.bfloat16),
        "w4_rows": w4g.reshape(9, c3),               # conv4 weight per spatial offset
        "g2": params["g2"].reshape(1, -1).astype(jnp.float32),
        "b2": params["b2"].reshape(1, -1).astype(jnp.float32),
        "g3": params["g3"].reshape(1, -1).astype(jnp.float32),
        "b3": params["b3"].reshape(1, -1).astype(jnp.float32),
    }


# ----------------------------------------------------------------------------------
# Full DCDiscriminator forward
# ----------------------------------------------------------------------------------
def dcdiscriminator_forward(x_nchw, gp):
    ndf = gp["w1"].shape[1]                                        # 64
    x = jnp.transpose(x_nchw, (0, 2, 3, 1)).astype(jnp.bfloat16)   # NCHW -> NHWC bf16

    # conv1: Conv2d(1, 64, 4, 2, 1, bias=False) + LeakyReLU(0.2)   28x28 -> 14x14
    p, (n, oh, ow) = im2col(x, 4, 4, 2, 1)
    h = conv_lrelu(p, gp["w1"]).reshape(n, oh, ow, ndf)

    # conv2: Conv2d(64, 128, 4, 2, 1) + BN(128) + LeakyReLU         14x14 -> 7x7
    p, (n, oh, ow) = im2col(h, 4, 4, 2, 1)
    m2 = n * oh * ow
    c2, s2, sq2 = conv_bn_stats(p, gp["w2"])
    h = bn_apply_lrelu(c2, m2, s2, sq2, gp["g2"], gp["b2"]).reshape(n, oh, ow, -1)

    # conv3(128->256, 3, 2, 0) + BN(256) + LeakyReLU + conv4(256->1, 3, 1, 0), fused
    p, (n, oh, ow) = im2col(h, 3, 3, 2, 0)                         # 7x7 -> 3x3
    out = conv_bn_lrelu_conv_tail(p, gp["w3"], gp["g3"], gp["b3"], gp["w4_rows"], n)
    return out                                                     # == out.view(-1)


def init_params(key, nc=1, ndf=64):
    k1, k2, k3, k4 = jax.random.split(key, 4)
    std = 0.02  # DCGAN-style deterministic init; all convs are bias=False (as in spec)
    return {
        "w1": std * jax.random.normal(k1, (ndf, nc, 4, 4), jnp.float32),
        "w2": std * jax.random.normal(k2, (ndf * 2, ndf, 4, 4), jnp.float32),
        "w3": std * jax.random.normal(k3, (ndf * 4, ndf * 2, 3, 3), jnp.float32),
        "w4": std * jax.random.normal(k4, (1, ndf * 4, 3, 3), jnp.float32),
        # BatchNorm affine params at their PyTorch defaults (weight=1, bias=0)
        "g2": jnp.ones((ndf * 2,), jnp.float32),
        "b2": jnp.zeros((ndf * 2,), jnp.float32),
        "g3": jnp.ones((ndf * 4,), jnp.float32),
        "b3": jnp.zeros((ndf * 4,), jnp.float32),
    }


if __name__ == "__main__":
    key = jax.random.PRNGKey(0)
    kx, kp = jax.random.split(key)
    # The module's geometry (3x3 valid conv at the end) requires 28x28 inputs.
    x = jax.random.normal(kx, (2, 1, 28, 28), jnp.float32)
    params = init_params(kp)
    gemm_params = prepare_params(params)        # hoisted one-time weight relayout

    fwd = jax.jit(dcdiscriminator_forward)
    out = jax.block_until_ready(fwd(x, gemm_params))
    assert out.shape == (2,), out.shape
    assert bool(jnp.all(jnp.isfinite(out)))
    print("KERNEL_OK")
</pallas_src>

<mosaic_0001>
module attributes {stable_mosaic.version = 11 : i64} {
  func.func @_conv_lrelu_kernel(%arg0: i32, %arg1: memref<208x16xbf16, #tpu.memory_space<vmem>>, %arg2: memref<16x64xbf16, #tpu.memory_space<vmem>>, %arg3: memref<208x64xbf16, #tpu.memory_space<vmem>>) attributes {dimension_semantics = [#tpu.dimension_semantics<parallel>], iteration_bounds = array<i64: 2>, scalar_prefetch = 0 : i64, scratch_operands = 0 : i64, tpu.core_type = #tpu.core_type<tc>, window_params = [{transform_indices = @transform_0, window_bounds = array<i64: 208, 16>}, {pipeline_mode = #tpu.pipeline_mode<synchronous>, transform_indices = @transform_1, window_bounds = array<i64: 16, 64>}, {transform_indices = @transform_2, window_bounds = array<i64: 208, 64>}]} {
    %c0 = arith.constant 0 : index
    %c0_0 = arith.constant 0 : index
    %0 = vector.load %arg1[%c0, %c0_0] : memref<208x16xbf16, #tpu.memory_space<vmem>>, vector<208x16xbf16>
    %c0_1 = arith.constant 0 : index
    %c0_2 = arith.constant 0 : index
    %1 = vector.load %arg2[%c0_1, %c0_2] : memref<16x64xbf16, #tpu.memory_space<vmem>>, vector<16x64xbf16>
    %cst = arith.constant dense<0.000000e+00> : vector<208x64xf32>
    %2 = tpu.matmul %0, %1, %cst {dimension_numbers = #tpu.dot_dimension_numbers<[1], [0], [0], [1], [0, 0, 1, 1], [], []>} : vector<208x16xbf16>, vector<16x64xbf16>, vector<208x64xf32> -> vector<208x64xf32>
    %cst_3 = arith.constant 0.000000e+00 : f32
    %3 = vector.broadcast %cst_3 : f32 to vector<208x64xf32>
    %4 = arith.cmpf oge, %2, %3 : vector<208x64xf32>
    %cst_4 = arith.constant 2.000000e-01 : f32
    %5 = vector.broadcast %cst_4 : f32 to vector<208x64xf32>
    %6 = arith.mulf %2, %5 : vector<208x64xf32>
    %7 = arith.select %4, %2, %6 : vector<208x64xi1>, vector<208x64xf32>
    %8 = arith.truncf %7 : vector<208x64xf32> to vector<208x64xbf16>
    %c0_5 = arith.constant 0 : index
    %c0_6 = arith.constant 0 : index
    %9 = vector.load %arg3[%c0_5, %c0_6] : memref<208x64xbf16, #tpu.memory_space<vmem>>, vector<208x64xbf16>
    tpu.vector_store %arg3[%c0_5, %c0_6], %8 {strides = array<i32>} : memref<208x64xbf16, #tpu.memory_space<vmem>>, vector<208x64xbf16>,
    return
  }
  func.func @transform_0(%arg0: i32) -> (i32, i32) {
    %c0_i32 = arith.constant 0 : i32
    %c0_i32_0 = arith.constant 0 : i32
    return %arg0, %c0_i32 : i32, i32
  }
  func.func @transform_1(%arg0: i32) -> (i32, i32) {
    %c0_i32 = arith.constant 0 : i32
    %c0_i32_0 = arith.constant 0 : i32
    %c0_i32_1 = arith.constant 0 : i32
    return %c0_i32, %c0_i32_0 : i32, i32
  }
  func.func @transform_2(%arg0: i32) -> (i32, i32) {
    %c0_i32 = arith.constant 0 : i32
    %c0_i32_0 = arith.constant 0 : i32
    return %arg0, %c0_i32 : i32, i32
  }
}

module attributes {stable_mosaic.version = 11 : i64} {
  func.func @_conv_stats_kernel(%arg0: i32, %arg1: memref<112x1024xbf16, #tpu.memory_space<vmem>>, %arg2: memref<1024x128xbf16, #tpu.memory_space<vmem>>, %arg3: memref<112x128xbf16, #tpu.memory_space<vmem>>, %arg4: memref<1x128xf32, #tpu.memory_space<vmem>>, %arg5: memref<1x128xf32, #tpu.memory_space<vmem>>) attributes {dimension_semantics = [#tpu.dimension_semantics<arbitrary>], iteration_bounds = array<i64: 1>, scalar_prefetch = 0 : i64, scratch_operands = 0 : i64, tpu.core_type = #tpu.core_type<tc>, window_params = [{transform_indices = @transform_0, window_bounds = array<i64: 112, 1024>}, {pipeline_mode = #tpu.pipeline_mode<synchronous>, transform_indices = @transform_1, window_bounds = array<i64: 1024, 128>}, {transform_indices = @transform_2, window_bounds = array<i64: 112, 128>}, {pipeline_mode = #tpu.pipeline_mode<synchronous>, transform_indices = @transform_3, window_bounds = array<i64: 1, 128>}, {pipeline_mode = #tpu.pipeline_mode<synchronous>, transform_indices = @transform_4, window_bounds = array<i64: 1, 128>}]} {
    %c0_i32 = arith.constant 0 : i32
    %0 = arith.cmpi eq, %arg0, %c0_i32 : i32
    %1 = arith.extui %0 : i1 to i32
    %c0_i32_0 = arith.constant 0 : i32
    %2 = arith.cmpi ne, %1, %c0_i32_0 : i32
    scf.if %2 {
      %cst_16 = arith.constant 0.000000e+00 : f32
      %19 = vector.broadcast %cst_16 : f32 to vector<1x128xf32>
      %c0_17 = arith.constant 0 : index
      %c0_18 = arith.constant 0 : index
      %20 = vector.load %arg4[%c0_17, %c0_18] : memref<1x128xf32, #tpu.memory_space<vmem>>, vector<1x128xf32>
      tpu.vector_store %arg4[%c0_17, %c0_18], %19 {strides = array<i32>} : memref<1x128xf32, #tpu.memory_space<vmem>>, vector<1x128xf32>,
      %cst_19 = arith.constant 0.000000e+00 : f32
      %21 = vector.broadcast %cst_19 : f32 to vector<1x128xf32>
      %c0_20 = arith.constant 0 : index
      %c0_21 = arith.constant 0 : index
      %22 = vector.load %arg5[%c0_20, %c0_21] : memref<1x128xf32, #tpu.memory_space<vmem>>, vector<1x128xf32>
      tpu.vector_store %arg5[%c0_20, %c0_21], %21 {strides = array<i32>} : memref<1x128xf32, #tpu.memory_space<vmem>>, vector<1x128xf32>,
    } else {
    }
    %c0 = arith.constant 0 : index
    %c0_1 = arith.constant 0 : index
    %3 = vector.load %arg1[%c0, %c0_1] : memref<112x1024xbf16, #tpu.memory_space<vmem>>, vector<112x1024xbf16>
    %c0_2 = arith.constant 0 : index
    %c0_3 = arith.constant 0 : index
    %4 = vector.load %arg2[%c0_2, %c0_3] : memref<1024x128xbf16, #tpu.memory_space<vmem>>, vector<1024x128xbf16>
    %cst = arith.constant dense<0.000000e+00> : vector<112x128xf32>
    %5 = tpu.matmul %3, %4, %cst {dimension_numbers = #tpu.dot_dimension_numbers<[1], [0], [0], [1], [0, 0, 1, 1], [], []>} : vector<112x1024xbf16>, vector<1024x128xbf16>, vector<112x128xf32> -> vector<112x128xf32>
    %6 = arith.truncf %5 : vector<112x128xf32> to vector<112x128xbf16>
    %c0_4 = arith.constant 0 : index
    %c0_5 = arith.constant 0 : index
    %7 = vector.load %arg3[%c0_4, %c0_5] : memref<112x128xbf16, #tpu.memory_space<vmem>>, vector<112x128xbf16>
    tpu.vector_store %arg3[%c0_4, %c0_5], %6 {strides = array<i32>} : memref<112x128xbf16, #tpu.memory_space<vmem>>, vector<112x128xbf16>,
    %c0_6 = arith.constant 0 : index
    %c0_7 = arith.constant 0 : index
    %8 = vector.load %arg4[%c0_6, %c0_7] : memref<1x128xf32, #tpu.memory_space<vmem>>, vector<1x128xf32>
    %cst_8 = arith.constant dense<0.000000e+00> : vector<128xf32>
    %9 = vector.multi_reduction <add>, %5, %cst_8 [0] : vector<112x128xf32> to vector<128xf32>
    %10 = vector.shape_cast %9 : vector<128xf32> to vector<1x128xf32>
    %11 = arith.addf %8, %10 : vector<1x128xf32>
    %c0_9 = arith.constant 0 : index
    %c0_10 = arith.constant 0 : index
    %12 = vector.load %arg4[%c0_9, %c0_10] : memref<1x128xf32, #tpu.memory_space<vmem>>, vector<1x128xf32>
    tpu.vector_store %arg4[%c0_9, %c0_10], %11 {strides = array<i32>} : memref<1x128xf32, #tpu.memory_space<vmem>>, vector<1x128xf32>,
    %c0_11 = arith.constant 0 : index
    %c0_12 = arith.constant 0 : index
    %13 = vector.load %arg5[%c0_11, %c0_12] : memref<1x128xf32, #tpu.memory_space<vmem>>, vector<1x128xf32>
    %14 = arith.mulf %5, %5 : vector<112x128xf32>
    %cst_13 = arith.constant dense<0.000000e+00> : vector<128xf32>
    %15 = vector.multi_reduction <add>, %14, %cst_13 [0] : vector<112x128xf32> to vector<128xf32>
    %16 = vector.shape_cast %15 : vector<128xf32> to vector<1x128xf32>
    %17 = arith.addf %13, %16 : vector<1x128xf32>
    %c0_14 = arith.constant 0 : index
    %c0_15 = arith.constant 0 : index
    %18 = vector.load %arg5[%c0_14, %c0_15] : memref<1x128xf32, #tpu.memory_space<vmem>>, vector<1x128xf32>
    tpu.vector_store %arg5[%c0_14, %c0_15], %17 {strides = array<i32>} : memref<1x128xf32, #tpu.memory_space<vmem>>, vector<1x128xf32>,
    return
  }
  func.func @transform_0(%arg0: i32) -> (i32, i32) {
    %c0_i32 = arith.constant 0 : i32
    %c0_i32_0 = arith.constant 0 : i32
    return %arg0, %c0_i32 : i32, i32
  }
  func.func @transform_1(%arg0: i32) -> (i32, i32) {
    %c0_i32 = arith.constant 0 : i32
    %c0_i32_0 = arith.constant 0 : i32
    %c0_i32_1 = arith.constant 0 : i32
    return %c0_i32, %c0_i32_0 : i32, i32
  }
  func.func @transform_2(%arg0: i32) -> (i32, i32) {
    %c0_i32 = arith.constant 0 : i32
    %c0_i32_0 = arith.constant 0 : i32
    return %arg0, %c0_i32 : i32, i32
  }
  func.func @transform_3(%arg0: i32) -> (i32, i32) {
    %c0_i32 = arith.constant 0 : i32
    %c0_i32_0 = arith.constant 0 : i32
    %c0_i32_1 = arith.constant 0 : i32
    return %c0_i32, %c0_i32_0 : i32, i32
  }
  func.func @transform_4(%arg0: i32) -> (i32, i32) {
    %c0_i32 = arith.constant 0 : i32
    %c0_i32_0 = arith.constant 0 : i32
    %c0_i32_1 = arith.constant 0 : i32
    return %c0_i32, %c0_i32_0 : i32, i32
  }
}

module attributes {stable_mosaic.version = 11 : i64} {
  func.func @_bn_apply_lrelu_kernel(%arg0: i32, %arg1: memref<112x128xbf16, #tpu.memory_space<vmem>>, %arg2: memref<1x128xf32, #tpu.memory_space<vmem>>, %arg3: memref<1x128xf32, #tpu.memory_space<vmem>>, %arg4: memref<1x128xf32, #tpu.memory_space<vmem>>, %arg5: memref<1x128xf32, #tpu.memory_space<vmem>>, %arg6: memref<112x128xbf16, #tpu.memory_space<vmem>>) attributes {dimension_semantics = [#tpu.dimension_semantics<parallel>], iteration_bounds = array<i64: 1>, scalar_prefetch = 0 : i64, scratch_operands = 0 : i64, tpu.core_type = #tpu.core_type<tc>, window_params = [{transform_indices = @transform_0, window_bounds = array<i64: 112, 128>}, {pipeline_mode = #tpu.pipeline_mode<synchronous>, transform_indices = @transform_1, window_bounds = array<i64: 1, 128>}, {pipeline_mode = #tpu.pipeline_mode<synchronous>, transform_indices = @transform_2, window_bounds = array<i64: 1, 128>}, {pipeline_mode = #tpu.pipeline_mode<synchronous>, transform_indices = @transform_3, window_bounds = array<i64: 1, 128>}, {pipeline_mode = #tpu.pipeline_mode<synchronous>, transform_indices = @transform_4, window_bounds = array<i64: 1, 128>}, {transform_indices = @transform_5, window_bounds = array<i64: 112, 128>}]} {
    %c0 = arith.constant 0 : index
    %c0_0 = arith.constant 0 : index
    %0 = vector.load %arg2[%c0, %c0_0] : memref<1x128xf32, #tpu.memory_space<vmem>>, vector<1x128xf32>
    %cst = arith.constant 0.0102040814 : f32
    %1 = vector.broadcast %cst : f32 to vector<1x128xf32>
    %2 = arith.mulf %0, %1 : vector<1x128xf32>
    %c0_1 = arith.constant 0 : index
    %c0_2 = arith.constant 0 : index
    %3 = vector.load %arg3[%c0_1, %c0_2] : memref<1x128xf32, #tpu.memory_space<vmem>>, vector<1x128xf32>
    %cst_3 = arith.constant 0.0102040814 : f32
    %4 = vector.broadcast %cst_3 : f32 to vector<1x128xf32>
    %5 = arith.mulf %3, %4 : vector<1x128xf32>
    %6 = arith.mulf %2, %2 : vector<1x128xf32>
    %7 = arith.subf %5, %6 : vector<1x128xf32>
    %c0_4 = arith.constant 0 : index
    %c0_5 = arith.constant 0 : index
    %8 = vector.load %arg4[%c0_4, %c0_5] : memref<1x128xf32, #tpu.memory_space<vmem>>, vector<1x128xf32>
    %cst_6 = arith.constant 9.99999974E-6 : f32
    %9 = vector.broadcast %cst_6 : f32 to vector<1x128xf32>
    %10 = arith.addf %7, %9 : vector<1x128xf32>
    %11 = math.rsqrt %10 : vector<1x128xf32>
    %12 = arith.mulf %8, %11 : vector<1x128xf32>
    %c0_7 = arith.constant 0 : index
    %c0_8 = arith.constant 0 : index
    %13 = vector.load %arg5[%c0_7, %c0_8] : memref<1x128xf32, #tpu.memory_space<vmem>>, vector<1x128xf32>
    %14 = arith.mulf %2, %12 : vector<1x128xf32>
    %15 = arith.subf %13, %14 : vector<1x128xf32>
    %c0_9 = arith.constant 0 : index
    %c0_10 = arith.constant 0 : index
    %16 = vector.load %arg1[%c0_9, %c0_10] : memref<112x128xbf16, #tpu.memory_space<vmem>>, vector<112x128xbf16>
    %17 = arith.extf %16 : vector<112x128xbf16> to vector<112x128xf32>
    %18 = vector.broadcast %12 : vector<1x128xf32> to vector<112x128xf32>
    %19 = arith.mulf %17, %18 : vector<112x128xf32>
    %20 = vector.broadcast %15 : vector<1x128xf32> to vector<112x128xf32>
    %21 = arith.addf %19, %20 : vector<112x128xf32>
    %cst_11 = arith.constant 0.000000e+00 : f32
    %22 = vector.broadcast %cst_11 : f32 to vector<112x128xf32>
    %23 = arith.cmpf oge, %21, %22 : vector<112x128xf32>
    %cst_12 = arith.constant 2.000000e-01 : f32
    %24 = vector.broadcast %cst_12 : f32 to vector<112x128xf32>
    %25 = arith.mulf %21, %24 : vector<112x128xf32>
    %26 = arith.select %23, %21, %25 : vector<112x128xi1>, vector<112x128xf32>
    %27 = arith.truncf %26 : vector<112x128xf32> to vector<112x128xbf16>
    %c0_13 = arith.constant 0 : index
    %c0_14 = arith.constant 0 : index
    %28 = vector.load %arg6[%c0_13, %c0_14] : memref<112x128xbf16, #tpu.memory_space<vmem>>, vector<112x128xbf16>
    tpu.vector_store %arg6[%c0_13, %c0_14], %27 {strides = array<i32>} : memref<112x128xbf16, #tpu.memory_space<vmem>>, vector<112x128xbf16>,
    return
  }
  func.func @transform_0(%arg0: i32) -> (i32, i32) {
    %c0_i32 = arith.constant 0 : i32
    %c0_i32_0 = arith.constant 0 : i32
    return %arg0, %c0_i32 : i32, i32
  }
  func.func @transform_1(%arg0: i32) -> (i32, i32) {
    %c0_i32 = arith.constant 0 : i32
    %c0_i32_0 = arith.constant 0 : i32
    %c0_i32_1 = arith.constant 0 : i32
    return %c0_i32, %c0_i32_0 : i32, i32
  }
  func.func @transform_2(%arg0: i32) -> (i32, i32) {
    %c0_i32 = arith.constant 0 : i32
    %c0_i32_0 = arith.constant 0 : i32
    %c0_i32_1 = arith.constant 0 : i32
    return %c0_i32, %c0_i32_0 : i32, i32
  }
  func.func @transform_3(%arg0: i32) -> (i32, i32) {
    %c0_i32 = arith.constant 0 : i32
    %c0_i32_0 = arith.constant 0 : i32
    %c0_i32_1 = arith.constant 0 : i32
    return %c0_i32, %c0_i32_0 : i32, i32
  }
  func.func @transform_4(%arg0: i32) -> (i32, i32) {
    %c0_i32 = arith.constant 0 : i32
    %c0_i32_0 = arith.constant 0 : i32
    %c0_i32_1 = arith.constant 0 : i32
    return %c0_i32, %c0_i32_0 : i32, i32
  }
  func.func @transform_5(%arg0: i32) -> (i32, i32) {
    %c0_i32 = arith.constant 0 : i32
    %c0_i32_0 = arith.constant 0 : i32
    return %arg0, %c0_i32 : i32, i32
  }
}

module attributes {stable_mosaic.version = 11 : i64} {
  func.func @_tail_kernel(%arg0: i32, %arg1: memref<32x1152xbf16, #tpu.memory_space<vmem>>, %arg2: memref<1152x256xbf16, #tpu.memory_space<vmem>>, %arg3: memref<1x256xf32, #tpu.memory_space<vmem>>, %arg4: memref<1x256xf32, #tpu.memory_space<vmem>>, %arg5: memref<32x256xf32, #tpu.memory_space<vmem>>, %arg6: memref<8x32xf32, #tpu.memory_space<vmem>>, %arg7: memref<8x1xf32, #tpu.memory_space<vmem>>) attributes {dimension_semantics = [#tpu.dimension_semantics<arbitrary>], iteration_bounds = array<i64: 1>, scalar_prefetch = 0 : i64, scratch_operands = 0 : i64, tpu.core_type = #tpu.core_type<tc>, window_params = [{pipeline_mode = #tpu.pipeline_mode<synchronous>, transform_indices = @transform_0, window_bounds = array<i64: 32, 1152>}, {pipeline_mode = #tpu.pipeline_mode<synchronous>, transform_indices = @transform_1, window_bounds = array<i64: 1152, 256>}, {pipeline_mode = #tpu.pipeline_mode<synchronous>, transform_indices = @transform_2, window_bounds = array<i64: 1, 256>}, {pipeline_mode = #tpu.pipeline_mode<synchronous>, transform_indices = @transform_3, window_bounds = array<i64: 1, 256>}, {pipeline_mode = #tpu.pipeline_mode<synchronous>, transform_indices = @transform_4, window_bounds = array<i64: 32, 256>}, {pipeline_mode = #tpu.pipeline_mode<synchronous>, transform_indices = @transform_5, window_bounds = array<i64: 8, 32>}, {pipeline_mode = #tpu.pipeline_mode<synchronous>, transform_indices = @transform_6, window_bounds = array<i64: 8, 1>}]} {
    %c0 = arith.constant 0 : index
    %c0_0 = arith.constant 0 : index
    %0 = vector.load %arg1[%c0, %c0_0] : memref<32x1152xbf16, #tpu.memory_space<vmem>>, vector<32x1152xbf16>
    %c0_1 = arith.constant 0 : index
    %c0_2 = arith.constant 0 : index
    %1 = vector.load %arg2[%c0_1, %c0_2] : memref<1152x256xbf16, #tpu.memory_space<vmem>>, vector<1152x256xbf16>
    %cst = arith.constant dense<0.000000e+00> : vector<32x256xf32>
    %2 = tpu.matmul %0, %1, %cst {dimension_numbers = #tpu.dot_dimension_numbers<[1], [0], [0], [1], [0, 0, 1, 1], [], []>} : vector<32x1152xbf16>, vector<1152x256xbf16>, vector<32x256xf32> -> vector<32x256xf32>
    %3 = tpu.iota {dimensions = array<i32: 0>} : vector<32x256xi32>
    %c18_i32 = arith.constant 18 : i32
    %4 = vector.broadcast %c18_i32 : i32 to vector<32x256xi32>
    %5 = arith.cmpi slt, %3, %4 : vector<32x256xi32>
    %6 = arith.extui %5 : vector<32x256xi1> to vector<32x256xi32>
    %7 = arith.sitofp %6 : vector<32x256xi32> to vector<32x256xf32>
    %8 = arith.mulf %2, %7 : vector<32x256xf32>
    %cst_3 = arith.constant dense<0.000000e+00> : vector<256xf32>
    %9 = vector.multi_reduction <add>, %8, %cst_3 [0] : vector<32x256xf32> to vector<256xf32>
    %10 = vector.shape_cast %9 : vector<256xf32> to vector<1x256xf32>
    %cst_4 = arith.constant 0.055555556 : f32
    %11 = vector.broadcast %cst_4 : f32 to vector<1x256xf32>
    %12 = arith.mulf %10, %11 : vector<1x256xf32>
    %13 = vector.broadcast %12 : vector<1x256xf32> to vector<32x256xf32>
    %14 = arith.subf %2, %13 : vector<32x256xf32>
    %15 = arith.mulf %14, %7 : vector<32x256xf32>
    %16 = arith.mulf %15, %15 : vector<32x256xf32>
    %cst_5 = arith.constant dense<0.000000e+00> : vector<256xf32>
    %17 = vector.multi_reduction <add>, %16, %cst_5 [0] : vector<32x256xf32> to vector<256xf32>
    %18 = vector.shape_cast %17 : vector<256xf32> to vector<1x256xf32>
    %cst_6 = arith.constant 0.055555556 : f32
    %19 = vector.broadcast %cst_6 : f32 to vector<1x256xf32>
    %20 = arith.mulf %18, %19 : vector<1x256xf32>
    %c0_7 = arith.constant 0 : index
    %c0_8 = arith.constant 0 : index
    %21 = vector.load %arg3[%c0_7, %c0_8] : memref<1x256xf32, #tpu.memory_space<vmem>>, vector<1x256xf32>
    %cst_9 = arith.constant 9.99999974E-6 : f32
    %22 = vector.broadcast %cst_9 : f32 to vector<1x256xf32>
    %23 = arith.addf %20, %22 : vector<1x256xf32>
    %24 = math.rsqrt %23 : vector<1x256xf32>
    %25 = arith.mulf %21, %24 : vector<1x256xf32>
    %c0_10 = arith.constant 0 : index
    %c0_11 = arith.constant 0 : index
    %26 = vector.load %arg4[%c0_10, %c0_11] : memref<1x256xf32, #tpu.memory_space<vmem>>, vector<1x256xf32>
    %27 = arith.mulf %12, %25 : vector<1x256xf32>
    %28 = arith.subf %26, %27 : vector<1x256xf32>
    %29 = vector.broadcast %25 : vector<1x256xf32> to vector<32x256xf32>
    %30 = arith.mulf %2, %29 : vector<32x256xf32>
    %31 = vector.broadcast %28 : vector<1x256xf32> to vector<32x256xf32>
    %32 = arith.addf %30, %31 : vector<32x256xf32>
    %cst_12 = arith.constant 0.000000e+00 : f32
    %33 = vector.broadcast %cst_12 : f32 to vector<32x256xf32>
    %34 = arith.cmpf oge, %32, %33 : vector<32x256xf32>
    %cst_13 = arith.constant 2.000000e-01 : f32
    %35 = vector.broadcast %cst_13 : f32 to vector<32x256xf32>
    %36 = arith.mulf %32, %35 : vector<32x256xf32>
    %37 = arith.select %34, %32, %36 : vector<32x256xi1>, vector<32x256xf32>
    %c0_14 = arith.constant 0 : index
    %c0_15 = arith.constant 0 : index
    %38 = vector.load %arg5[%c0_14, %c0_15] : memref<32x256xf32, #tpu.memory_space<vmem>>, vector<32x256xf32>
    %39 = arith.mulf %37, %38 : vector<32x256xf32>
    %c0_16 = arith.constant 0 : index
    %c0_17 = arith.constant 0 : index
    %40 = vector.load %arg6[%c0_16, %c0_17] : memref<8x32xf32, #tpu.memory_space<vmem>>, vector<8x32xf32>
    %cst_18 = arith.constant dense<0.000000e+00> : vector<8x256xf32>
    %41 = tpu.matmul %40, %39, %cst_18 {dimension_numbers = #tpu.dot_dimension_numbers<[1], [0], [0], [1], [0, 0, 1, 1], [], []>} : vector<8x32xf32>, vector<32x256xf32>, vector<8x256xf32> -> vector<8x256xf32>
    %cst_19 = arith.constant dense<0.000000e+00> : vector<8xf32>
    %42 = vector.multi_reduction <add>, %41, %cst_19 [1] : vector<8x256xf32> to vector<8xf32>
    %43 = vector.shape_cast %42 : vector<8xf32> to vector<8x1xf32>
    %c0_20 = arith.constant 0 : index
    %c0_21 = arith.constant 0 : index
    %44 = vector.load %arg7[%c0_20, %c0_21] : memref<8x1xf32, #tpu.memory_space<vmem>>, vector<8x1xf32>
    tpu.vector_store %arg7[%c0_20, %c0_21], %43 {strides = array<i32>} : memref<8x1xf32, #tpu.memory_space<vmem>>, vector<8x1xf32>,
    return
  }
  func.func @transform_0(%arg0: i32) -> (i32, i32) {
    %c0_i32 = arith.constant 0 : i32
    %c0_i32_0 = arith.constant 0 : i32
    %c0_i32_1 = arith.constant 0 : i32
    return %c0_i32, %c0_i32_0 : i32, i32
  }
  func.func @transform_1(%arg0: i32) -> (i32, i32) {
    %c0_i32 = arith.constant 0 : i32
    %c0_i32_0 = arith.constant 0 : i32
    %c0_i32_1 = arith.constant 0 : i32
    return %c0_i32, %c0_i32_0 : i32, i32
  }
  func.func @transform_2(%arg0: i32) -> (i32, i32) {
    %c0_i32 = arith.constant 0 : i32
    %c0_i32_0 = arith.constant 0 : i32
    %c0_i32_1 = arith.constant 0 : i32
    return %c0_i32, %c0_i32_0 : i32, i32
  }
  func.func @transform_3(%arg0: i32) -> (i32, i32) {
    %c0_i32 = arith.constant 0 : i32
    %c0_i32_0 = arith.constant 0 : i32
    %c0_i32_1 = arith.constant 0 : i32
    return %c0_i32, %c0_i32_0 : i32, i32
  }
  func.func @transform_4(%arg0: i32) -> (i32, i32) {
    %c0_i32 = arith.constant 0 : i32
    %c0_i32_0 = arith.constant 0 : i32
    %c0_i32_1 = arith.constant 0 : i32
    return %c0_i32, %c0_i32_0 : i32, i32
  }
  func.func @transform_5(%arg0: i32) -> (i32, i32) {
    %c0_i32 = arith.constant 0 : i32
    %c0_i32_0 = arith.constant 0 : i32
    %c0_i32_1 = arith.constant 0 : i32
    return %c0_i32, %c0_i32_0 : i32, i32
  }
  func.func @transform_6(%arg0: i32) -> (i32, i32) {
    %c0_i32 = arith.constant 0 : i32
    %c0_i32_0 = arith.constant 0 : i32
    %c0_i32_1 = arith.constant 0 : i32
    return %c0_i32, %c0_i32_0 : i32, i32
  }
}

</mosaic_0001>

<bundles_post_ra>
// kernel: dcdiscriminator_forward.4
= control target key start
LH: loop header
LB: loop body
LE: loop exit
PB: predicated region body
PF: predicated region fallthrough
CT: control target
= control target key end

     0   :  { %s896_s9 = smov 0   ;;  %s1018_s0 = inlined_call_operand.vmem [shape: bf16[416,16], index: 0, kind: input, shape index: {}]   ;;  %s1019_s1 = inlined_call_operand.vmem [shape: bf16[16,64], index: 1, kind: input, shape index: {}]   ;;  %s1020_s2 = inlined_call_operand.vmem [shape: bf16[416,64], index: 2, kind: output, shape index: {}]  }
   0x1 LB: > { %s689_s10 = sadd.s32 4294967295, %s877_s9   ;;  %p693_p0 = scmp.ge.s32.totalorder %s877_s9, 1  ;;  %s877_s9 = sphi %s896_s9, %s12_s9  }
   0x2   : > { %p113_p1 = scmp.lt.s32.totalorder %s877_s9, 3 }
   0x4   : > { %p114_p2 = pnand %p693_p0, %p113_p1 }
   0x5   : > { %s135_s13 = smul.u32 (!%p114_p2), 26, %s689_s10 }
   0x6   : > { %117 = sbr.rel (%p114_p2) target bundleno = 267 (0x10b), region = 28 }
   0x7   : > { %p136_p3 = scmp.lt.s32.totalorder (!%p114_p2), %s135_s13, 51 }
   0xb   : > { %v857_v0 = vld [vmem:[%s1019_s1] sm:$0xff]   ;;  %v879_v1 = vmov 0.0   ;;  %vm880_vm0 = vmmov 0   ;;  %s1022_s13 = smov (!%p136_p3, %s135_s13), 51  ;;  %vm247_vm1 = vcmask 130048   ;;  %vm606_vm4 = vcmask 519168  }
   0xc   : > { %791 = vmatprep.subr.bf16.mxu0 %v879_v1  ;;  %845 = vmatprep.subr.bf16.mxu1 %v879_v1  ;;  %s694_s14 = sshll.u32 %s1022_s13, 2 }
   0xd   : > { %792 = vmatpush3.bf16.msra.mxu0 %v857_v0  ;;  %846 = vmatpush3.bf16.msra.mxu1 %v857_v0  ;;  %s917_s17 = scalar_lea.vmem %s1018_s0, %s694_s14  ;;  %s961_s20 = scalar_lea.vmem %s1020_s2, %s694_s14 }
   0xe   : > { %793 = vmatprep.mubr.msk.bf16.mxu0 %vm880_vm0, %v879_v1  ;;  %821 = vmatprep.mubr.msk.bf16.mxu1 %vm880_vm0, %v879_v1  ;;  %v858_v2 = vld [vmem:[%s917_s17] sm:$0xff]   ;;  %v859_v3 = vld [vmem:[%s917_s17 + $0x38] sm:$0xff]   ;;  %v860_v4 = vld [vmem:[%s917_s17 + $0x8] sm:$0xff]  }
   0xf   : > { %v861_v5 = vld [vmem:[%s917_s17 + $0x40] sm:$0xff]   ;;  %v862_v6 = vld [vmem:[%s917_s17 + $0x10] sm:$0xff]   ;;  %v863_v7 = vld [vmem:[%s917_s17 + $0x48] sm:$0xff]  }
  0x10   : > { %794 = vmatmul.mubr.msk.bf16.vlgmr.msra.gmra.mxu0 %vm247_vm1, %v858_v2  ;;  %822 = vmatmul.mubr.msk.bf16.vlgmr.msra.gmra.mxu1 %vm247_vm1, %v859_v3  ;;  %v864_v8 = vld [vmem:[%s917_s17 + $0x18] sm:$0xff]   ;;  %v865_v9 = vld [vmem:[%s917_s17 + $0x50] sm:$0xff]   ;;  %v866_v10 = vld [vmem:[%s917_s17 + $0x20] sm:$0xff]  }
  0x11   : > { %797 = vmatprep.mubr.msk.bf16.mxu0 %vm880_vm0, %v879_v1  ;;  %825 = vmatprep.mubr.msk.bf16.mxu1 %vm880_vm0, %v879_v1  ;;  %v867_v11 = vld [vmem:[%s917_s17 + $0x58] sm:$0xff]   ;;  %v868_v12 = vld [vmem:[%s917_s17 + $0x28] sm:$0xff]   ;;  %v869_v13 = vld [vmem:[%s917_s17 + $0x60] sm:$0xff]  }
  0x12   : > { %v870_v14 = vld [vmem:[%s917_s17 + $0x30] sm:$0xff]  }
  0x18   : > { %798 = vmatmul.mubr.msk.bf16.gmra.mxu0 %vm247_vm1, %v860_v4  ;;  %826 = vmatmul.mubr.msk.bf16.gmra.mxu1 %vm247_vm1, %v861_v5 }
  0x19   : > { %801 = vmatprep.mubr.msk.bf16.mxu0 %vm880_vm0, %v879_v1  ;;  %829 = vmatprep.mubr.msk.bf16.mxu1 %vm880_vm0, %v879_v1 }
  0x20   : > { %802 = vmatmul.mubr.msk.bf16.gmra.mxu0 %vm247_vm1, %v862_v6  ;;  %830 = vmatmul.mubr.msk.bf16.gmra.mxu1 %vm247_vm1, %v863_v7 }
  0x21   : > { %805 = vmatprep.mubr.msk.bf16.mxu0 %vm880_vm0, %v879_v1  ;;  %833 = vmatprep.mubr.msk.bf16.mxu1 %vm880_vm0, %v879_v1 }
  0x28   : > { %806 = vmatmul.mubr.msk.bf16.gmra.mxu0 %vm247_vm1, %v864_v8  ;;  %834 = vmatmul.mubr.msk.bf16.gmra.mxu1 %vm247_vm1, %v865_v9 }
  0x29   : > { %809 = vmatprep.mubr.msk.bf16.mxu0 %vm880_vm0, %v879_v1  ;;  %837 = vmatprep.mubr.msk.bf16.mxu1 %vm880_vm0, %v879_v1 }
  0x30   : > { %810 = vmatmul.mubr.msk.bf16.gmra.mxu0 %vm247_vm1, %v866_v10  ;;  %838 = vmatmul.mubr.msk.bf16.gmra.mxu1 %vm247_vm1, %v867_v11 }
  0x31   : > { %813 = vmatprep.mubr.msk.bf16.mxu0 %vm880_vm0, %v879_v1  ;;  %841 = vmatprep.mubr.msk.bf16.mxu1 %vm880_vm0, %v879_v1 }
  0x38   : > { %814 = vmatmul.mubr.msk.bf16.gmra.mxu0 %vm247_vm1, %v868_v12  ;;  %842 = vmatmul.mubr.msk.bf16.gmra.mxu1 %vm247_vm1, %v869_v13 }
  0x39   : > { %817 = vmatprep.mubr.msk.bf16.mxu0 %vm880_vm0, %v879_v1 }
  0x40   : > { %818 = vmatmul.mubr.msk.bf16.gmra.mxu0 %vm247_vm1, %v870_v14 }
  0xd0   : > { %v321_v15 = vpop.f32.mrf.mxu0  ;;  %v377_v17 = vpop.f32.mrf.mxu1 }
  0xd1   : > { %vm424_vm2 = vcmp.ge.f32.partialorder %v321_v15, 0.0  ;;  %v450_v16 = vmul.f32 0.2, %v321_v15  ;;  %vm438_vm3 = vcmp.ge.f32.partialorder %v377_v17, 0.0  ;;  %v464_v19 = vmul.f32 0.2, %v377_v17 }
  0xd2   : > { %v795_v18 = vpop.f32.mrf.mxu0  ;;  %v823_v21 = vpop.f32.mrf.mxu1 }
  0xd3   : > { %v476_v20 = vsel %vm424_vm2, %v321_v15, %v450_v16  ;;  %v490_v23 = vsel %vm438_vm3, %v377_v17, %v464_v19 }
  0xd4   : > { %v751_v22 = vpack.c.bf16 %v476_v20, %v476_v20  ;;  %v324_v24 = vpop.f32.mrf.mxu0  ;;  %v765_v25 = vpack.c.bf16 %v490_v23, %v490_v23  ;;  %v380_v27 = vpop.f32.mrf.mxu1 }
  0xd5   : > { %vm425_vm5 = vcmp.ge.f32.partialorder %v324_v24, 0.0  ;;  %v451_v26 = vmul.f32 0.2, %v324_v24  ;;  %vm439_vm6 = vcmp.ge.f32.partialorder %v380_v27, 0.0  ;;  %v465_v29 = vmul.f32 0.2, %v380_v27 }
  0xd6   : > { %607 = vst.msk [vmem:[%s961_s20] sm:$0xf] %vm606_vm4, %v751_v22  ;;  %v796_v28 = vpop.f32.mrf.mxu0  ;;  %621 = vst.msk [vmem:[%s961_s20 + $0x38] sm:$0xf] %vm606_vm4, %v765_v25  ;;  %v824_v31 = vpop.f32.mrf.mxu1 }
  0xd7   : > { %v477_v30 = vsel %vm425_vm5, %v324_v24, %v451_v26  ;;  %v491_v33 = vsel %vm439_vm6, %v380_v27, %v465_v29 }
  0xd8   : > { %v752_v32 = vpack.c.bf16 %v477_v30, %v477_v30  ;;  %v329_v34 = vpop.f32.mrf.mxu0  ;;  %v766_v35 = vpack.c.bf16 %v491_v33, %v491_v33  ;;  %v385_v37 = vpop.f32.mrf.mxu1 }
  0xd9   : > { %vm426_vm7 = vcmp.ge.f32.partialorder %v329_v34, 0.0  ;;  %v452_v36 = vmul.f32 0.2, %v329_v34  ;;  %vm440_vm8 = vcmp.ge.f32.partialorder %v385_v37, 0.0  ;;  %v466_v39 = vmul.f32 0.2, %v385_v37 }
  0xda   : > { %608 = vst.msk [vmem:[%s961_s20 + $0x4] sm:$0xf] %vm606_vm4, %v752_v32  ;;  %v799_v38 = vpop.f32.mrf.mxu0  ;;  %622 = vst.msk [vmem:[%s961_s20 + $0x3c] sm:$0xf] %vm606_vm4, %v766_v35  ;;  %v827_v41 = vpop.f32.mrf.mxu1 }
  0xdb   : > { %v478_v40 = vsel %vm426_vm7, %v329_v34, %v452_v36  ;;  %v492_v43 = vsel %vm440_vm8, %v385_v37, %v466_v39 }
  0xdc   : > { %v753_v42 = vpack.c.bf16 %v478_v40, %v478_v40  ;;  %v332_v44 = vpop.f32.mrf.mxu0  ;;  %v767_v45 = vpack.c.bf16 %v492_v43, %v492_v43  ;;  %v388_v47 = vpop.f32.mrf.mxu1 }
  0xdd   : > { %vm427_vm9 = vcmp.ge.f32.partialorder %v332_v44, 0.0  ;;  %v453_v46 = vmul.f32 0.2, %v332_v44  ;;  %vm441_vm10 = vcmp.ge.f32.partialorder %v388_v47, 0.0  ;;  %v467_v49 = vmul.f32 0.2, %v388_v47 }
  0xde   : > { %609 = vst.msk [vmem:[%s961_s20 + $0x8] sm:$0xf] %vm606_vm4, %v753_v42  ;;  %v800_v48 = vpop.f32.mrf.mxu0  ;;  %623 = vst.msk [vmem:[%s961_s20 + $0x40] sm:$0xf] %vm606_vm4, %v767_v45  ;;  %v828_v51 = vpop.f32.mrf.mxu1 }
  0xdf   : > { %v479_v50 = vsel %vm427_vm9, %v332_v44, %v453_v46  ;;  %v493_v53 = vsel %vm441_vm10, %v388_v47, %v467_v49 }
  0xe0   : > { %v754_v52 = vpack.c.bf16 %v479_v50, %v479_v50  ;;  %v337_v54 = vpop.f32.mrf.mxu0  ;;  %v768_v55 = vpack.c.bf16 %v493_v53, %v493_v53  ;;  %v393_v57 = vpop.f32.mrf.mxu1 }
  0xe1   : > { %vm428_vm11 = vcmp.ge.f32.partialorder %v337_v54, 0.0  ;;  %v454_v56 = vmul.f32 0.2, %v337_v54  ;;  %vm442_vm12 = vcmp.ge.f32.partialorder %v393_v57, 0.0  ;;  %v468_v59 = vmul.f32 0.2, %v393_v57 }
  0xe2   : > { %610 = vst.msk [vmem:[%s961_s20 + $0xc] sm:$0xf] %vm606_vm4, %v754_v52  ;;  %v803_v58 = vpop.f32.mrf.mxu0  ;;  %624 = vst.msk [vmem:[%s961_s20 + $0x44] sm:$0xf] %vm606_vm4, %v768_v55  ;;  %v831_v61 = vpop.f32.mrf.mxu1 }
  0xe3   : > { %v480_v60 = vsel %vm428_vm11, %v337_v54, %v454_v56  ;;  %v494_v63 = vsel %vm442_vm12, %v393_v57, %v468_v59 }
  0xe4   : > { %v755_v62 = vpack.c.bf16 %v480_v60, %v480_v60  ;;  %v340_v0 = vpop.f32.mrf.mxu0  ;;  %v769_v1 = vpack.c.bf16 %v494_v63, %v494_v63  ;;  %v396_v3 = vpop.f32.mrf.mxu1 }
  0xe5   : > { %vm429_vm13 = vcmp.ge.f32.partialorder %v340_v0, 0.0  ;;  %v455_v2 = vmul.f32 0.2, %v340_v0  ;;  %vm443_vm14 = vcmp.ge.f32.partialorder %v396_v3, 0.0  ;;  %v469_v5 = vmul.f32 0.2, %v396_v3 }
  0xe6   : > { %611 = vst.msk [vmem:[%s961_s20 + $0x10] sm:$0xf] %vm606_vm4, %v755_v62  ;;  %v804_v4 = vpop.f32.mrf.mxu0  ;;  %625 = vst.msk [vmem:[%s961_s20 + $0x48] sm:$0xf] %vm606_vm4, %v769_v1  ;;  %v832_v7 = vpop.f32.mrf.mxu1 }
  0xe7   : > { %v481_v6 = vsel %vm429_vm13, %v340_v0, %v455_v2  ;;  %v495_v9 = vsel %vm443_vm14, %v396_v3, %v469_v5 }
  0xe8   : > { %v756_v8 = vpack.c.bf16 %v481_v6, %v481_v6  ;;  %v345_v10 = vpop.f32.mrf.mxu0  ;;  %v770_v11 = vpack.c.bf16 %v495_v9, %v495_v9  ;;  %v401_v13 = vpop.f32.mrf.mxu1 }
  0xe9   : > { %vm430_vm15 = vcmp.ge.f32.partialorder %v345_v10, 0.0  ;;  %v456_v12 = vmul.f32 0.2, %v345_v10  ;;  %vm444_vm0 = vcmp.ge.f32.partialorder %v401_v13, 0.0  ;;  %v470_v15 = vmul.f32 0.2, %v401_v13 }
  0xea   : > { %612 = vst.msk [vmem:[%s961_s20 + $0x14] sm:$0xf] %vm606_vm4, %v756_v8  ;;  %v807_v14 = vpop.f32.mrf.mxu0  ;;  %626 = vst.msk [vmem:[%s961_s20 + $0x4c] sm:$0xf] %vm606_vm4, %v770_v11  ;;  %v835_v17 = vpop.f32.mrf.mxu1 }
  0xeb   : > { %v482_v16 = vsel %vm430_vm15, %v345_v10, %v456_v12  ;;  %v496_v19 = vsel %vm444_vm0, %v401_v13, %v470_v15 }
  0xec   : > { %v757_v18 = vpack.c.bf16 %v482_v16, %v482_v16  ;;  %v348_v20 = vpop.f32.mrf.mxu0  ;;  %v771_v21 = vpack.c.bf16 %v496_v19, %v496_v19  ;;  %v404_v23 = vpop.f32.mrf.mxu1 }
  0xed   : > { %vm431_vm1 = vcmp.ge.f32.partialorder %v348_v20, 0.0  ;;  %v457_v22 = vmul.f32 0.2, %v348_v20  ;;  %vm445_vm2 = vcmp.ge.f32.partialorder %v404_v23, 0.0  ;;  %v471_v25 = vmul.f32 0.2, %v404_v23 }
  0xee   : > { %613 = vst.msk [vmem:[%s961_s20 + $0x18] sm:$0xf] %vm606_vm4, %v757_v18  ;;  %v808_v24 = vpop.f32.mrf.mxu0  ;;  %627 = vst.msk [vmem:[%s961_s20 + $0x50] sm:$0xf] %vm606_vm4, %v771_v21  ;;  %v836_v27 = vpop.f32.mrf.mxu1 }
  0xef   : > { %v483_v26 = vsel %vm431_vm1, %v348_v20, %v457_v22  ;;  %v497_v29 = vsel %vm445_vm2, %v404_v23, %v471_v25 }
  0xf0   : > { %v758_v28 = vpack.c.bf16 %v483_v26, %v483_v26  ;;  %v353_v30 = vpop.f32.mrf.mxu0  ;;  %v772_v31 = vpack.c.bf16 %v497_v29, %v497_v29  ;;  %v409_v33 = vpop.f32.mrf.mxu1 }
  0xf1   : > { %vm432_vm3 = vcmp.ge.f32.partialorder %v353_v30, 0.0  ;;  %v458_v32 = vmul.f32 0.2, %v353_v30  ;;  %vm446_vm5 = vcmp.ge.f32.partialorder %v409_v33, 0.0  ;;  %v472_v35 = vmul.f32 0.2, %v409_v33 }
  0xf2   : > { %614 = vst.msk [vmem:[%s961_s20 + $0x1c] sm:$0xf] %vm606_vm4, %v758_v28  ;;  %v811_v34 = vpop.f32.mrf.mxu0  ;;  %628 = vst.msk [vmem:[%s961_s20 + $0x54] sm:$0xf] %vm606_vm4, %v772_v31  ;;  %v839_v37 = vpop.f32.mrf.mxu1 }
  0xf3   : > { %v484_v36 = vsel %vm432_vm3, %v353_v30, %v458_v32  ;;  %v498_v39 = vsel %vm446_vm5, %v409_v33, %v472_v35 }
  0xf4   : > { %v759_v38 = vpack.c.bf16 %v484_v36, %v484_v36  ;;  %v356_v40 = vpop.f32.mrf.mxu0  ;;  %v773_v41 = vpack.c.bf16 %v498_v39, %v498_v39  ;;  %v412_v43 = vpop.f32.mrf.mxu1 }
  0xf5   : > { %vm433_vm6 = vcmp.ge.f32.partialorder %v356_v40, 0.0  ;;  %v459_v42 = vmul.f32 0.2, %v356_v40  ;;  %vm447_vm7 = vcmp.ge.f32.partialorder %v412_v43, 0.0  ;;  %v473_v45 = vmul.f32 0.2, %v412_v43 }
  0xf6   : > { %615 = vst.msk [vmem:[%s961_s20 + $0x20] sm:$0xf] %vm606_vm4, %v759_v38  ;;  %v812_v44 = vpop.f32.mrf.mxu0  ;;  %629 = vst.msk [vmem:[%s961_s20 + $0x58] sm:$0xf] %vm606_vm4, %v773_v41  ;;  %v840_v47 = vpop.f32.mrf.mxu1 }
  0xf7   : > { %v485_v46 = vsel %vm433_vm6, %v356_v40, %v459_v42  ;;  %v499_v49 = vsel %vm447_vm7, %v412_v43, %v473_v45 }
  0xf8   : > { %v760_v48 = vpack.c.bf16 %v485_v46, %v485_v46  ;;  %v361_v50 = vpop.f32.mrf.mxu0  ;;  %v774_v51 = vpack.c.bf16 %v499_v49, %v499_v49  ;;  %v417_v53 = vpop.f32.mrf.mxu1 }
  0xf9   : > { %vm434_vm8 = vcmp.ge.f32.partialorder %v361_v50, 0.0  ;;  %v460_v52 = vmul.f32 0.2, %v361_v50  ;;  %vm448_vm9 = vcmp.ge.f32.partialorder %v417_v53, 0.0  ;;  %v474_v55 = vmul.f32 0.2, %v417_v53 }
  0xfa   : > { %616 = vst.msk [vmem:[%s961_s20 + $0x24] sm:$0xf] %vm606_vm4, %v760_v48  ;;  %v815_v54 = vpop.f32.mrf.mxu0  ;;  %630 = vst.msk [vmem:[%s961_s20 + $0x5c] sm:$0xf] %vm606_vm4, %v774_v51  ;;  %v843_v57 = vpop.f32.mrf.mxu1 }
  0xfb   : > { %v486_v56 = vsel %vm434_vm8, %v361_v50, %v460_v52  ;;  %v500_v59 = vsel %vm448_vm9, %v417_v53, %v474_v55 }
  0xfc   : > { %v761_v58 = vpack.c.bf16 %v486_v56, %v486_v56  ;;  %v364_v60 = vpop.f32.mrf.mxu0  ;;  %v775_v61 = vpack.c.bf16 %v500_v59, %v500_v59  ;;  %v420_v63 = vpop.f32.mrf.mxu1 }
  0xfd   : > { %vm435_vm10 = vcmp.ge.f32.partialorder %v364_v60, 0.0  ;;  %v461_v62 = vmul.f32 0.2, %v364_v60  ;;  %vm449_vm11 = vcmp.ge.f32.partialorder %v420_v63, 0.0  ;;  %v475_v1 = vmul.f32 0.2, %v420_v63 }
  0xfe   : > { %617 = vst.msk [vmem:[%s961_s20 + $0x28] sm:$0xf] %vm606_vm4, %v761_v58  ;;  %v816_v0 = vpop.f32.mrf.mxu0  ;;  %631 = vst.msk [vmem:[%s961_s20 + $0x60] sm:$0xf] %vm606_vm4, %v775_v61  ;;  %v844_v3 = vpop.f32.mrf.mxu1 }
  0xff   : > { %v487_v2 = vsel %vm435_vm10, %v364_v60, %v461_v62  ;;  %v501_v5 = vsel %vm449_vm11, %v420_v63, %v475_v1 }
 0x100   : > { %v762_v4 = vpack.c.bf16 %v487_v2, %v487_v2  ;;  %v369_v6 = vpop.f32.mrf.mxu0  ;;  %v776_v7 = vpack.c.bf16 %v501_v5, %v501_v5 }
 0x101   : > { %vm436_vm12 = vcmp.ge.f32.partialorder %v369_v6, 0.0  ;;  %v462_v8 = vmul.f32 0.2, %v369_v6 }
 0x102   : > { %618 = vst.msk [vmem:[%s961_s20 + $0x2c] sm:$0xf] %vm606_vm4, %v762_v4  ;;  %v819_v9 = vpop.f32.mrf.mxu0  ;;  %632 = vst.msk [vmem:[%s961_s20 + $0x64] sm:$0xf] %vm606_vm4, %v776_v7 }
 0x103   : > { %v488_v10 = vsel %vm436_vm12, %v369_v6, %v462_v8 }
 0x104   : > { %v763_v11 = vpack.c.bf16 %v488_v10, %v488_v10  ;;  %v372_v12 = vpop.f32.mrf.mxu0 }
 0x105   : > { %vm437_vm13 = vcmp.ge.f32.partialorder %v372_v12, 0.0  ;;  %v463_v13 = vmul.f32 0.2, %v372_v12 }
 0x106   : > { %619 = vst.msk [vmem:[%s961_s20 + $0x30] sm:$0xf] %vm606_vm4, %v763_v11  ;;  %v820_v14 = vpop.f32.mrf.mxu0 }
 0x107   : > { %v489_v15 = vsel %vm437_vm13, %v372_v12, %v463_v13 }
 0x108   : > { %v764_v16 = vpack.c.bf16 %v489_v15, %v489_v15 }
 0x10a   : > { %620 = vst.msk [vmem:[%s961_s20 + $0x34] sm:$0xf] %vm606_vm4, %v764_v16 }
 0x10b PF: > { %s12_s9 = sadd.s32 1, %s877_s9  }
 0x10c   : > { %p9_p4 = scmp.ge.s32.totalorder %s12_s9, 4  }
 0x10e   :  { %11 = sbr.rel (!%p9_p4) target bundleno = 1 (0x1), region = 58 }

// kernel: dcdiscriminator_forward.6
= control target key start
LH: loop header
LB: loop body
LE: loop exit
PB: predicated region body
PF: predicated region fallthrough
CT: control target
= control target key end

     0   :  { %v62_v7 = vlaneseq  ;;  %s422_s1 = inlined_call_operand.vmem [shape: f32[1,128], index: 1, kind: input, shape index: {}]   ;;  %s423_s2 = inlined_call_operand.vmem [shape: f32[1,128], index: 2, kind: input, shape index: {}]   ;;  %s424_s0 = inlined_call_operand.vmem [shape: bf16[112,128], index: 0, kind: input, shape index: {}]   ;;  %s425_s3 = inlined_call_operand.vmem [shape: f32[1,128], index: 3, kind: input, shape index: {}]   ;;  %s426_s4 = inlined_call_operand.vmem [shape: f32[1,128], index: 4, kind: input, shape index: {}]   ;;  %s427_s5 = inlined_call_operand.vmem [shape: bf16[112,128], index: 5, kind: output, shape index: {}]  }
   0x1   :  { %v20_v0 = vld [vmem:[%s422_s1] sm:$0x1]  ;;  %v308_v11 = vld [vmem:[%s424_s0 + $0x8] sm:$0xff]   ;;  %v309_v13 = vld [vmem:[%s424_s0 + $0x10] sm:$0xff]  }
   0x2   :  { %v22_v1 = vld [vmem:[%s423_s2] sm:$0x1]  ;;  %v21_v2 = vmul.f32 0.010204081, %v20_v0  ;;  %v63_v8 = vshrl.u32 %v62_v7, 7  ;;  %v310_v14 = vld [vmem:[%s424_s0 + $0x18] sm:$0xff]   ;;  %v251_v20 = vunpack.c.l.bf16 %v308_v11  ;;  %v252_v21 = vunpack.c.h.bf16 %v308_v11 }
   0x3   :  { %v23_v3 = vmul.f32 0.010204081, %v22_v1  ;;  %v246_v9 = vld [vmem:[%s424_s0] sm:$0xff]   ;;  %v312_v22 = vld [vmem:[%s424_s0 + $0x28] sm:$0xff]   ;;  %v313_v23 = vld [vmem:[%s424_s0 + $0x30] sm:$0xff]   ;;  %v255_v25 = vunpack.c.l.bf16 %v309_v13  ;;  %v256_v26 = vunpack.c.h.bf16 %v309_v13  ;;  %v259_v27 = vunpack.c.l.bf16 %v310_v14 }
   0x4   :  { %v24_v4 = vmul.f32 %v21_v2, %v21_v2  ;;  %v26_v10 = vld [vmem:[%s425_s3] sm:$0x1]  ;;  %v64_v12 = vsub.s32 0, %v63_v8  ;;  %v247_v16 = vunpack.c.l.bf16 %v246_v9  ;;  %v248_v19 = vunpack.c.h.bf16 %v246_v9 }
   0x5   :  { %v311_v17 = vld [vmem:[%s424_s0 + $0x20] sm:$0xff]   ;;  %v260_v28 = vunpack.c.h.bf16 %v310_v14  ;;  %v267_v33 = vunpack.c.l.bf16 %v312_v22  ;;  %v268_v34 = vunpack.c.h.bf16 %v312_v22  ;;  %v271_v35 = vunpack.c.l.bf16 %v313_v23 }
   0x6   :  { %v25_v5 = vsub.f32 %v23_v3, %v24_v4  ;;  %v30_v24 = vld [vmem:[%s426_s4] sm:$0x1]  ;;  %v263_v31 = vunpack.c.l.bf16 %v311_v17  ;;  %v264_v32 = vunpack.c.h.bf16 %v311_v17  ;;  %v272_v36 = vunpack.c.h.bf16 %v313_v23 }
   0x8   :  { %v27_v6 = vadd.f32 1e-05, %v25_v5 }
   0xa   :  { %320 = vrsqrt.f32 %v27_v6 }
  0x17   :  { %v321_v15 = vpop.eup %320 }
  0x18   :  { %v29_v18 = vmul.f32 %v321_v15, %v26_v10 }
  0x1a   :  { %v31_v29 = vmul.f32 %v29_v18, %v21_v2  ;;  %v65_v30 = vrot.slane %v29_v18, %v64_v12 }
  0x1c   :  { %v32_v37 = vsub.f32 %v30_v24, %v31_v29  ;;  %v67_v38 = vmul.f32 %v247_v16, %v65_v30  ;;  %v68_v39 = vmul.f32 %v248_v19, %v65_v30  ;;  %v69_v40 = vmul.f32 %v251_v20, %v65_v30 }
  0x1d   :  { %v70_v41 = vmul.f32 %v252_v21, %v65_v30  ;;  %v71_v42 = vmul.f32 %v255_v25, %v65_v30  ;;  %v72_v43 = vmul.f32 %v256_v26, %v65_v30  ;;  %v73_v44 = vmul.f32 %v259_v27, %v65_v30 }
  0x1e   :  { %v385_v45 = vrot.slane %v32_v37, %v64_v12  ;;  %v74_v46 = vmul.f32 %v260_v28, %v65_v30  ;;  %v75_v47 = vmul.f32 %v263_v31, %v65_v30  ;;  %v76_v48 = vmul.f32 %v264_v32, %v65_v30 }
  0x1f   :  { %v77_v49 = vmul.f32 %v267_v33, %v65_v30  ;;  %v78_v50 = vmul.f32 %v268_v34, %v65_v30  ;;  %v79_v51 = vmul.f32 %v271_v35, %v65_v30  ;;  %v80_v52 = vmul.f32 %v272_v36, %v65_v30 }
  0x20   :  { %v87_v53 = vadd.f32 %v385_v45, %v67_v38  ;;  %v88_v54 = vadd.f32 %v385_v45, %v68_v39  ;;  %v89_v55 = vadd.f32 %v385_v45, %v69_v40  ;;  %v90_v56 = vadd.f32 %v385_v45, %v70_v41 }
  0x21   :  { %v91_v57 = vadd.f32 %v385_v45, %v71_v42  ;;  %v92_v58 = vadd.f32 %v385_v45, %v72_v43  ;;  %v93_v59 = vadd.f32 %v385_v45, %v73_v44  ;;  %v94_v60 = vadd.f32 %v385_v45, %v74_v46 }
  0x22   :  { %vm101_vm0 = vcmp.ge.f32.partialorder %v87_v53, 0.0  ;;  %vm102_vm1 = vcmp.ge.f32.partialorder %v88_v54, 0.0  ;;  %v115_v61 = vmul.f32 0.2, %v87_v53  ;;  %v116_v62 = vmul.f32 0.2, %v88_v54 }
  0x23   :  { %vm103_vm2 = vcmp.ge.f32.partialorder %v89_v55, 0.0  ;;  %vm104_vm3 = vcmp.ge.f32.partialorder %v90_v56, 0.0  ;;  %v117_v63 = vmul.f32 0.2, %v89_v55  ;;  %v118_v0 = vmul.f32 0.2, %v90_v56 }
  0x24   :  { %v129_v1 = vsel %vm101_vm0, %v87_v53, %v115_v61  ;;  %v130_v2 = vsel %vm102_vm1, %v88_v54, %v116_v62  ;;  %vm105_vm4 = vcmp.ge.f32.partialorder %v91_v57, 0.0  ;;  %vm106_vm5 = vcmp.ge.f32.partialorder %v92_v58, 0.0 }
  0x25   :  { %v276_v3 = vpack.c.bf16 %v130_v2, %v129_v1  ;;  %v131_v4 = vsel %vm103_vm2, %v89_v55, %v117_v63  ;;  %v132_v5 = vsel %vm104_vm3, %v90_v56, %v118_v0  ;;  %v119_v6 = vmul.f32 0.2, %v91_v57 }
  0x26   :  { %v281_v7 = vpack.c.bf16 %v132_v5, %v131_v4  ;;  %v120_v8 = vmul.f32 0.2, %v92_v58  ;;  %vm107_vm6 = vcmp.ge.f32.partialorder %v93_v59, 0.0  ;;  %vm108_vm7 = vcmp.ge.f32.partialorder %v94_v60, 0.0 }
  0x27   :  { %277 = vst [vmem:[%s427_s5] sm:$0xff] %v276_v3   ;;  %v133_v9 = vsel %vm105_vm4, %v91_v57, %v119_v6  ;;  %v121_v10 = vmul.f32 0.2, %v93_v59  ;;  %v122_v11 = vmul.f32 0.2, %v94_v60  ;;  %v95_v12 = vadd.f32 %v385_v45, %v75_v47 }
  0x28   :  { %314 = vst [vmem:[%s427_s5 + $0x8] sm:$0xff] %v281_v7   ;;  %v134_v13 = vsel %vm106_vm5, %v92_v58, %v120_v8  ;;  %v96_v14 = vadd.f32 %v385_v45, %v76_v48  ;;  %v97_v15 = vadd.f32 %v385_v45, %v77_v49  ;;  %v98_v16 = vadd.f32 %v385_v45, %v78_v50 }
  0x29   :  { %v286_v17 = vpack.c.bf16 %v134_v13, %v133_v9  ;;  %v135_v18 = vsel %vm107_vm6, %v93_v59, %v121_v10  ;;  %v136_v19 = vsel %vm108_vm7, %v94_v60, %v122_v11  ;;  %vm109_vm8 = vcmp.ge.f32.partialorder %v95_v12, 0.0 }
  0x2a   :  { %v291_v20 = vpack.c.bf16 %v136_v19, %v135_v18  ;;  %vm110_vm9 = vcmp.ge.f32.partialorder %v96_v14, 0.0  ;;  %v123_v21 = vmul.f32 0.2, %v95_v12  ;;  %v124_v22 = vmul.f32 0.2, %v96_v14 }
  0x2b   :  { %315 = vst [vmem:[%s427_s5 + $0x10] sm:$0xff] %v286_v17   ;;  %vm111_vm10 = vcmp.ge.f32.partialorder %v97_v15, 0.0  ;;  %vm112_vm11 = vcmp.ge.f32.partialorder %v98_v16, 0.0  ;;  %v125_v23 = vmul.f32 0.2, %v97_v15  ;;  %v99_v27 = vadd.f32 %v385_v45, %v79_v51 }
  0x2c   :  { %v126_v24 = vmul.f32 0.2, %v98_v16  ;;  %316 = vst [vmem:[%s427_s5 + $0x18] sm:$0xff] %v291_v20   ;;  %v137_v25 = vsel %vm109_vm8, %v95_v12, %v123_v21  ;;  %v138_v26 = vsel %vm110_vm9, %v96_v14, %v124_v22  ;;  %v100_v28 = vadd.f32 %v385_v45, %v80_v52 }
  0x2d   :  { %v296_v29 = vpack.c.bf16 %v138_v26, %v137_v25  ;;  %v139_v30 = vsel %vm111_vm10, %v97_v15, %v125_v23  ;;  %vm113_vm12 = vcmp.ge.f32.partialorder %v99_v27, 0.0  ;;  %v127_v33 = vmul.f32 0.2, %v99_v27 }
  0x2e   :  { %v140_v31 = vsel %vm112_vm11, %v98_v16, %v126_v24  ;;  %vm114_vm13 = vcmp.ge.f32.partialorder %v100_v28, 0.0  ;;  %v128_v34 = vmul.f32 0.2, %v100_v28 }
  0x2f   :  { %v301_v32 = vpack.c.bf16 %v140_v31, %v139_v30  ;;  %317 = vst [vmem:[%s427_s5 + $0x20] sm:$0xff] %v296_v29   ;;  %v141_v35 = vsel %vm113_vm12, %v99_v27, %v127_v33 }
  0x30   :  { %v142_v36 = vsel %vm114_vm13, %v100_v28, %v128_v34 }
  0x31   :  { %318 = vst [vmem:[%s427_s5 + $0x28] sm:$0xff] %v301_v32   ;;  %v306_v37 = vpack.c.bf16 %v142_v36, %v141_v35 }
  0x33   :  { %319 = vst [vmem:[%s427_s5 + $0x30] sm:$0xff] %v306_v37  }

// kernel: dcdiscriminator_forward.5
= control target key start
LH: loop header
LB: loop body
LE: loop exit
PB: predicated region body
PF: predicated region fallthrough
CT: control target
= control target key end

     0   :  { %s2450_s1 = inlined_call_operand.vmem [shape: bf16[1024,128], index: 1, kind: input, shape index: {}]   ;;  %s2451_s0 = inlined_call_operand.vmem [shape: bf16[112,1024], index: 0, kind: input, shape index: {}]   ;;  %s2452_s3 = inlined_call_operand.vmem [shape: f32[1,128], index: 3, kind: output, shape index: {1}]   ;;  %s2453_s4 = inlined_call_operand.vmem [shape: f32[1,128], index: 4, kind: output, shape index: {2}]   ;;  %s2454_s2 = inlined_call_operand.vmem [shape: bf16[112,128], index: 2, kind: output, shape index: {0}]  }
   0x1   :  { %v1787_v0 = vld [vmem:[%s2450_s1 + $0x78] sm:$0xff]   ;;  %v1791_v4 = vld [vmem:[%s2450_s1 + $0x70] sm:$0xff]   ;;  %v1795_v8 = vld [vmem:[%s2450_s1 + $0x68] sm:$0xff]  }
   0x2   :  { %v1788_v1 = vld [vmem:[%s2450_s1 + $0xf8] sm:$0xff]   ;;  %1554 = vmatprep.subr.bf16.mxu0 %v1787_v0  ;;  %v1792_v5 = vld [vmem:[%s2450_s1 + $0xf0] sm:$0xff]   ;;  %v1796_v9 = vld [vmem:[%s2450_s1 + $0xe8] sm:$0xff]  }
   0x3   :  { %v1789_v2 = vld [vmem:[%s2450_s1 + $0x38] sm:$0xff]   ;;  %1612 = vmatprep.subr.bf16.mxu1 %v1788_v1  ;;  %v1793_v6 = vld [vmem:[%s2450_s1 + $0x30] sm:$0xff]   ;;  %v1797_v10 = vld [vmem:[%s2450_s1 + $0x28] sm:$0xff]  }
   0x4   :  { %v1790_v3 = vld [vmem:[%s2450_s1 + $0xb8] sm:$0xff]   ;;  %1555 = vmatpush3.bf16.msra.mxu0 %v1789_v2  ;;  %v1794_v7 = vld [vmem:[%s2450_s1 + $0xb0] sm:$0xff]   ;;  %v1798_v11 = vld [vmem:[%s2450_s1 + $0xa8] sm:$0xff]  }
   0x5   :  { %1613 = vmatpush3.bf16.msra.mxu1 %v1790_v3  ;;  %1556 = vmatprep.subr.bf16.mxu0 %v1791_v4  ;;  %v1799_v12 = vld [vmem:[%s2450_s1 + $0x60] sm:$0xff]   ;;  %v1803_v16 = vld [vmem:[%s2450_s1 + $0x58] sm:$0xff]   ;;  %v1807_v20 = vld [vmem:[%s2450_s1 + $0x50] sm:$0xff]  }
   0x6   :  { %1614 = vmatprep.subr.bf16.mxu1 %v1792_v5  ;;  %v1800_v13 = vld [vmem:[%s2450_s1 + $0xe0] sm:$0xff]   ;;  %v1804_v17 = vld [vmem:[%s2450_s1 + $0xd8] sm:$0xff]   ;;  %v1808_v21 = vld [vmem:[%s2450_s1 + $0xd0] sm:$0xff]  }
   0x7   :  { %v1801_v14 = vld [vmem:[%s2450_s1 + $0x20] sm:$0xff]   ;;  %v1805_v18 = vld [vmem:[%s2450_s1 + $0x18] sm:$0xff]   ;;  %v1809_v22 = vld [vmem:[%s2450_s1 + $0x10] sm:$0xff]  }
   0x8   :  { %1557 = vmatpush3.bf16.msra.mxu0 %v1793_v6  ;;  %v1802_v15 = vld [vmem:[%s2450_s1 + $0xa0] sm:$0xff]   ;;  %v1806_v19 = vld [vmem:[%s2450_s1 + $0x98] sm:$0xff]   ;;  %v1810_v23 = vld [vmem:[%s2450_s1 + $0x90] sm:$0xff]  }
   0x9   :  { %1615 = vmatpush3.bf16.msra.mxu1 %v1794_v7  ;;  %1558 = vmatprep.subr.bf16.mxu0 %v1795_v8  ;;  %v1811_v24 = vld [vmem:[%s2450_s1 + $0x48] sm:$0xff]   ;;  %v1815_v28 = vld [vmem:[%s2450_s1 + $0x40] sm:$0xff]   ;;  %v1819_v40 = vld [vmem:[%s2450_s1 + $0x178] sm:$0xff]  }
   0xa   :  { %1616 = vmatprep.subr.bf16.mxu1 %v1796_v9  ;;  %v1812_v25 = vld [vmem:[%s2450_s1 + $0xc8] sm:$0xff]   ;;  %v1816_v29 = vld [vmem:[%s2450_s1 + $0xc0] sm:$0xff]   ;;  %v1820_v41 = vld [vmem:[%s2450_s1 + $0x138] sm:$0xff]  }
   0xb   :  { %v1813_v26 = vld [vmem:[%s2450_s1 + $0x8] sm:$0xff]   ;;  %v1817_v30 = vld [vmem:[%s2450_s1] sm:$0xff]   ;;  %v1821_v42 = vld [vmem:[%s2450_s1 + $0x1f8] sm:$0xff]  }
   0xc   :  { %1559 = vmatpush3.bf16.msra.mxu0 %v1797_v10  ;;  %v1814_v27 = vld [vmem:[%s2450_s1 + $0x88] sm:$0xff]   ;;  %v1818_v31 = vld [vmem:[%s2450_s1 + $0x80] sm:$0xff]   ;;  %v1822_v43 = vld [vmem:[%s2450_s1 + $0x1b8] sm:$0xff]  }
   0xd   :  { %1617 = vmatpush3.bf16.msra.mxu1 %v1798_v11  ;;  %1560 = vmatprep.subr.bf16.mxu0 %v1799_v12  ;;  %v21_v32 = vld [vmem:[%s2451_s0] sm:$0xff]  ;;  %v22_v34 = vld [vmem:[%s2451_s0 + $0x8] sm:$0xff]  ;;  %v1823_v50 = vld [vmem:[%s2450_s1 + $0x170] sm:$0xff]  }
   0xe   :  { %1618 = vmatprep.subr.bf16.mxu1 %v1800_v13  ;;  %v25_v33 = vld [vmem:[%s2451_s0 + $0x20] sm:$0xff]  ;;  %v26_v37 = vld [vmem:[%s2451_s0 + $0x28] sm:$0xff]  ;;  %v1824_v52 = vld [vmem:[%s2450_s1 + $0x130] sm:$0xff]  }
   0xf   :  { %v1365_v35 = vcombine.low %v21_v32, %v25_v33  ;;  %v1366_v36 = vcombine.high %v21_v32, %v25_v33  ;;  %v1367_v38 = vcombine.low %v22_v34, %v26_v37  ;;  %v1368_v39 = vcombine.high %v22_v34, %v26_v37  ;;  %v29_v44 = vld [vmem:[%s2451_s0 + $0x40] sm:$0xff]  ;;  %v30_v47 = vld [vmem:[%s2451_s0 + $0x48] sm:$0xff]  ;;  %v1825_v54 = vld [vmem:[%s2450_s1 + $0x1f0] sm:$0xff]  }
  0x10   :  { %1561 = vmatpush3.bf16.msra.mxu0 %v1801_v14  ;;  %v33_v45 = vld [vmem:[%s2451_s0 + $0x60] sm:$0xff]  ;;  %v34_v48 = vld [vmem:[%s2451_s0 + $0x68] sm:$0xff]  ;;  %v1826_v55 = vld [vmem:[%s2450_s1 + $0x1b0] sm:$0xff]  }
  0x11   :  { %1619 = vmatpush3.bf16.msra.mxu1 %v1802_v15  ;;  %1562 = vmatprep.subr.bf16.mxu0 %v1803_v16  ;;  %v1374_v46 = vcombine.high %v29_v44, %v33_v45  ;;  %v1376_v49 = vcombine.high %v30_v47, %v34_v48  ;;  %v1373_v51 = vcombine.low %v29_v44, %v33_v45  ;;  %v1827_v56 = vld [vmem:[%s2450_s1 + $0x168] sm:$0xff]   ;;  %v37_v57 = vld [vmem:[%s2451_s0 + $0x80] sm:$0xff]  ;;  %v1835_v14 = vld [vmem:[%s2450_s1 + $0x158] sm:$0xff]  }
  0x12   :  { %1620 = vmatprep.subr.bf16.mxu1 %v1804_v17  ;;  %901 = vmatprep.mubr.bf16.mxu0 %v1366_v36  ;;  %v1375_v53 = vcombine.low %v30_v47, %v34_v48  ;;  %v41_v58 = vld [vmem:[%s2451_s0 + $0xa0] sm:$0xff]  ;;  %v38_v59 = vld [vmem:[%s2451_s0 + $0x88] sm:$0xff]  ;;  %v1836_v15 = vld [vmem:[%s2450_s1 + $0x118] sm:$0xff]  }
  0x13   :  { %990 = vmatprep.mubr.bf16.mxu1 %v1368_v39  ;;  %v42_v60 = vld [vmem:[%s2451_s0 + $0xa8] sm:$0xff]  ;;  %v1382_v61 = vcombine.high %v37_v57, %v41_v58  ;;  %v1381_v2 = vcombine.low %v37_v57, %v41_v58  ;;  %v1831_v3 = vld [vmem:[%s2450_s1 + $0x160] sm:$0xff]   ;;  %v1837_v17 = vld [vmem:[%s2450_s1 + $0x1d8] sm:$0xff]  }
  0x14   :  { %1563 = vmatpush3.bf16.msra.mxu0 %v1805_v18  ;;  %v1384_v62 = vcombine.high %v38_v59, %v42_v60  ;;  %v1828_v63 = vld [vmem:[%s2450_s1 + $0x128] sm:$0xff]   ;;  %v1383_v4 = vcombine.low %v38_v59, %v42_v60  ;;  %v1832_v5 = vld [vmem:[%s2450_s1 + $0x120] sm:$0xff]   ;;  %v28_v57 = vld [vmem:[%s2451_s0 + $0x38] sm:$0xff] }
  0x15   :  { %1621 = vmatpush3.bf16.msra.mxu1 %v1806_v19  ;;  %1564 = vmatprep.subr.bf16.mxu0 %v1807_v20  ;;  %v1829_v0 = vld [vmem:[%s2450_s1 + $0x1e8] sm:$0xff]   ;;  %v45_v6 = vld [vmem:[%s2451_s0 + $0xc0] sm:$0xff] }
  0x16   :  { %1622 = vmatprep.subr.bf16.mxu1 %v1808_v21  ;;  %v1830_v1 = vld [vmem:[%s2450_s1 + $0x1a8] sm:$0xff]   ;;  %v49_v7 = vld [vmem:[%s2451_s0 + $0xe0] sm:$0xff] }
  0x17   :  { %v46_v8 = vld [vmem:[%s2451_s0 + $0xc8] sm:$0xff]  ;;  %v1390_v9 = vcombine.high %v45_v6, %v49_v7  ;;  %v1833_v12 = vld [vmem:[%s2450_s1 + $0x1e0] sm:$0xff]   ;;  %v1389_v16 = vcombine.low %v45_v6, %v49_v7  ;;  %v39_v6 = vld [vmem:[%s2451_s0 + $0x90] sm:$0xff] }
  0x18   :  { %1565 = vmatpush3.bf16.msra.mxu0 %v1809_v22  ;;  %v50_v10 = vld [vmem:[%s2451_s0 + $0xe8] sm:$0xff]  ;;  %v1834_v13 = vld [vmem:[%s2450_s1 + $0x1a0] sm:$0xff]   ;;  %v43_v7 = vld [vmem:[%s2451_s0 + $0xb0] sm:$0xff] }
  0x19   :  { %1623 = vmatpush3.bf16.msra.mxu1 %v1810_v23  ;;  %1566 = vmatprep.subr.bf16.mxu0 %v1811_v24  ;;  %v1392_v11 = vcombine.high %v46_v8, %v50_v10  ;;  %v53_v18 = vld [vmem:[%s2451_s0 + $0x100] sm:$0xff]  ;;  %v1391_v20 = vcombine.low %v46_v8, %v50_v10  ;;  %v54_v22 = vld [vmem:[%s2451_s0 + $0x108] sm:$0xff]  ;;  %v40_v8 = vld [vmem:[%s2451_s0 + $0x98] sm:$0xff] }
  0x1a   :  { %1624 = vmatprep.subr.bf16.mxu1 %v1812_v25  ;;  %v57_v19 = vld [vmem:[%s2451_s0 + $0x120] sm:$0xff]  ;;  %v58_v23 = vld [vmem:[%s2451_s0 + $0x128] sm:$0xff]  ;;  %v1838_v25 = vld [vmem:[%s2450_s1 + $0x198] sm:$0xff]  }
  0x1b   :  { %v1398_v21 = vcombine.high %v53_v18, %v57_v19  ;;  %v1400_v24 = vcombine.high %v54_v22, %v58_v23  ;;  %v62_v32 = vld [vmem:[%s2451_s0 + $0x148] sm:$0xff]  ;;  %v1397_v34 = vcombine.low %v53_v18, %v57_v19  ;;  %v1399_v36 = vcombine.low %v54_v22, %v58_v23  ;;  %v1848_v47 = vld [vmem:[%s2450_s1 + $0x100] sm:$0xff]   ;;  %v55_v22 = vld [vmem:[%s2451_s0 + $0x110] sm:$0xff] }
  0x1c   :  { %1567 = vmatpush3.bf16.msra.mxu0 %v1813_v26  ;;  %v1839_v26 = vld [vmem:[%s2450_s1 + $0x150] sm:$0xff]   ;;  %v66_v33 = vld [vmem:[%s2451_s0 + $0x168] sm:$0xff]  ;;  %v1385_v18 = vcombine.low %v39_v6, %v43_v7 }
  0x1d   :  { %1625 = vmatpush3.bf16.msra.mxu1 %v1814_v27  ;;  %1568 = vmatprep.subr.bf16.mxu0 %v1815_v28  ;;  %v1840_v27 = vld [vmem:[%s2450_s1 + $0x110] sm:$0xff]   ;;  %v1408_v39 = vcombine.high %v62_v32, %v66_v33  ;;  %v70_v44 = vld [vmem:[%s2451_s0 + $0x188] sm:$0xff] }
  0x1e   :  { %1626 = vmatprep.subr.bf16.mxu1 %v1816_v29  ;;  %v1841_v28 = vld [vmem:[%s2450_s1 + $0x1d0] sm:$0xff]   ;;  %v74_v45 = vld [vmem:[%s2451_s0 + $0x1a8] sm:$0xff] }
  0x1f   :  { %v1842_v29 = vld [vmem:[%s2450_s1 + $0x190] sm:$0xff]   ;;  %v1415_v59 = vcombine.low %v70_v44, %v74_v45 }
  0x20   :  { %1569 = vmatpush3.bf16.msra.mxu0 %v1817_v30  ;;  %v61_v30 = vld [vmem:[%s2451_s0 + $0x140] sm:$0xff]  ;;  %v59_v23 = vld [vmem:[%s2451_s0 + $0x130] sm:$0xff] }
  0x21   :  { %1627 = vmatpush3.bf16.msra.mxu1 %v1818_v31  ;;  %1670 = vmatprep.subr.bf16.mxu0 %v1819_v40  ;;  %v65_v31 = vld [vmem:[%s2451_s0 + $0x160] sm:$0xff]  ;;  %v1845_v40 = vld [vmem:[%s2450_s1 + $0x1c8] sm:$0xff]  }
  0x22   :  { %1728 = vmatprep.subr.bf16.mxu1 %v1821_v42  ;;  %v1406_v37 = vcombine.high %v61_v30, %v65_v31  ;;  %v69_v42 = vld [vmem:[%s2451_s0 + $0x180] sm:$0xff]  ;;  %v1405_v48 = vcombine.low %v61_v30, %v65_v31  ;;  %v63_v30 = vld [vmem:[%s2451_s0 + $0x150] sm:$0xff] }
  0x23   :  { %902 = vmatmul.mubr.bf16.vlgmr.msra.gmra.mxu0 %v1365_v35  ;;  %v1843_v35 = vld [vmem:[%s2450_s1 + $0x148] sm:$0xff]   ;;  %v67_v31 = vld [vmem:[%s2451_s0 + $0x170] sm:$0xff] }
  0x24   :  { %991 = vmatmul.mubr.bf16.vlgmr.msra.gmra.mxu1 %v1367_v38  ;;  %1671 = vmatpush3.bf16.msra.mxu0 %v1820_v41  ;;  %v1844_v38 = vld [vmem:[%s2450_s1 + $0x108] sm:$0xff]  }
  0x25   :  { %1729 = vmatpush3.bf16.msra.mxu1 %v1822_v43  ;;  %909 = vmatprep.mubr.bf16.mxu0 %v1374_v46  ;;  %v1846_v41 = vld [vmem:[%s2450_s1 + $0x188] sm:$0xff]   ;;  %v73_v43 = vld [vmem:[%s2451_s0 + $0x1a0] sm:$0xff] }
  0x26   :  { %998 = vmatprep.mubr.bf16.mxu1 %v1376_v49  ;;  %1672 = vmatprep.subr.bf16.mxu0 %v1823_v50  ;;  %v1847_v46 = vld [vmem:[%s2450_s1 + $0x140] sm:$0xff]   ;;  %v1407_v50 = vcombine.low %v62_v32, %v66_v33  ;;  %v1413_v58 = vcombine.low %v69_v42, %v73_v43  ;;  %v64_v32 = vld [vmem:[%s2451_s0 + $0x158] sm:$0xff] }
  0x27   :  { %1730 = vmatprep.subr.bf16.mxu1 %v1825_v54  ;;  %v1849_v49 = vld [vmem:[%s2450_s1 + $0x1c0] sm:$0xff]   ;;  %v23_v54 = vld [vmem:[%s2451_s0 + $0x10] sm:$0xff]  ;;  %v68_v33 = vld [vmem:[%s2451_s0 + $0x178] sm:$0xff] }
  0x28   :  { %1673 = vmatpush3.bf16.msra.mxu0 %v1824_v52  ;;  %v1850_v52 = vld [vmem:[%s2450_s1 + $0x180] sm:$0xff]  }
  0x29   :  { %1731 = vmatpush3.bf16.msra.mxu1 %v1826_v55  ;;  %1674 = vmatprep.subr.bf16.mxu0 %v1827_v56  ;;  %v27_v55 = vld [vmem:[%s2451_s0 + $0x30] sm:$0xff]  ;;  %v24_v56 = vld [vmem:[%s2451_s0 + $0x18] sm:$0xff] }
  0x2a   :  { %1732 = vmatprep.subr.bf16.mxu1 %v1829_v0  ;;  %v1370_v60 = vcombine.high %v23_v54, %v27_v55  ;;  %v32_v0 = vld [vmem:[%s2451_s0 + $0x58] sm:$0xff] }
  0x2b   :  { %910 = vmatmul.mubr.bf16.gmra.mxu0 %v1373_v51  ;;  %v1414_v51 = vcombine.high %v69_v42, %v73_v43  ;;  %v1409_v42 = vcombine.low %v63_v30, %v67_v31  ;;  %v1411_v43 = vcombine.low %v64_v32, %v68_v33 }
  0x2c   :  { %999 = vmatmul.mubr.bf16.gmra.mxu1 %v1375_v53  ;;  %917 = vmatprep.mubr.bf16.mxu0 %v1382_v61  ;;  %v1416_v53 = vcombine.high %v70_v44, %v74_v45  ;;  %v1372_v61 = vcombine.high %v24_v56, %v28_v57 }
  0x2d   :  { %1006 = vmatprep.mubr.bf16.mxu1 %v1384_v62  ;;  %1675 = vmatpush3.bf16.msra.mxu0 %v1828_v63  ;;  %v31_v62 = vld [vmem:[%s2451_s0 + $0x50] sm:$0xff] }
  0x2e   :  { %1733 = vmatpush3.bf16.msra.mxu1 %v1830_v1  ;;  %1676 = vmatprep.subr.bf16.mxu0 %v1831_v3  ;;  %v35_v63 = vld [vmem:[%s2451_s0 + $0x70] sm:$0xff]  ;;  %v36_v1 = vld [vmem:[%s2451_s0 + $0x78] sm:$0xff]  ;;  %v1371_v3 = vcombine.low %v24_v56, %v28_v57 }
  0x2f   :  { %1734 = vmatprep.subr.bf16.mxu1 %v1833_v12  ;;  %v1377_v10 = vcombine.low %v31_v62, %v35_v63  ;;  %v1386_v12 = vcombine.high %v39_v6, %v43_v7 }
  0x31   :  { %1677 = vmatpush3.bf16.msra.mxu0 %v1832_v5  ;;  %v1380_v5 = vcombine.high %v32_v0, %v36_v1 }
  0x32   :  { %1735 = vmatpush3.bf16.msra.mxu1 %v1834_v13  ;;  %1678 = vmatprep.subr.bf16.mxu0 %v1835_v14  ;;  %v47_v14 = vld [vmem:[%s2451_s0 + $0xd0] sm:$0xff] }
  0x33   :  { %918 = vmatmul.mubr.bf16.gmra.mxu0 %v1381_v2  ;;  %1736 = vmatprep.subr.bf16.mxu1 %v1837_v17  ;;  %v1369_v2 = vcombine.low %v23_v54, %v27_v55  ;;  %v52_v17 = vld [vmem:[%s2451_s0 + $0xf8] sm:$0xff] }
  0x34   :  { %1007 = vmatmul.mubr.bf16.gmra.mxu1 %v1383_v4  ;;  %925 = vmatprep.mubr.bf16.mxu0 %v1390_v9  ;;  %v1378_v4 = vcombine.high %v31_v62, %v35_v63  ;;  %v44_v9 = vld [vmem:[%s2451_s0 + $0xb8] sm:$0xff] }
  0x35   :  { %1014 = vmatprep.mubr.bf16.mxu1 %v1392_v11  ;;  %1679 = vmatpush3.bf16.msra.mxu0 %v1836_v15  ;;  %v1379_v11 = vcombine.low %v32_v0, %v36_v1  ;;  %v1388_v13 = vcombine.high %v40_v8, %v44_v9  ;;  %v51_v15 = vld [vmem:[%s2451_s0 + $0xf0] sm:$0xff]  ;;  %v1387_v19 = vcombine.low %v40_v8, %v44_v9 }
  0x36   :  { %1737 = vmatpush3.bf16.msra.mxu1 %v1838_v25  ;;  %1680 = vmatprep.subr.bf16.mxu0 %v1839_v26  ;;  %v60_v25 = vld [vmem:[%s2451_s0 + $0x138] sm:$0xff]  ;;  %v1393_v26 = vcombine.low %v47_v14, %v51_v15 }
  0x37   :  { %1738 = vmatprep.subr.bf16.mxu1 %v1841_v28  ;;  %v1402_v28 = vcombine.high %v55_v22, %v59_v23 }
  0x39   :  { %1681 = vmatpush3.bf16.msra.mxu0 %v1840_v27 }
  0x3a   :  { %1739 = vmatpush3.bf16.msra.mxu1 %v1842_v29  ;;  %1682 = vmatprep.subr.bf16.mxu0 %v1843_v35 }
  0x3b   :  { %926 = vmatmul.mubr.bf16.gmra.mxu0 %v1389_v16  ;;  %1740 = vmatprep.subr.bf16.mxu1 %v1845_v40  ;;  %v48_v16 = vld [vmem:[%s2451_s0 + $0xd8] sm:$0xff] }
  0x3c   :  { %1015 = vmatmul.mubr.bf16.gmra.mxu1 %v1391_v20  ;;  %933 = vmatprep.mubr.bf16.mxu0 %v1398_v21  ;;  %v1394_v20 = vcombine.high %v47_v14, %v51_v15  ;;  %v1396_v21 = vcombine.high %v48_v16, %v52_v17  ;;  %v1395_v27 = vcombine.low %v48_v16, %v52_v17  ;;  %v72_v40 = vld [vmem:[%s2451_s0 + $0x198] sm:$0xff] }
  0x3d   :  { %1022 = vmatprep.mubr.bf16.mxu1 %v1400_v24  ;;  %1683 = vmatpush3.bf16.msra.mxu0 %v1844_v38  ;;  %v56_v24 = vld [vmem:[%s2451_s0 + $0x118] sm:$0xff]  ;;  %v71_v38 = vld [vmem:[%s2451_s0 + $0x190] sm:$0xff] }
  0x3e   :  { %1741 = vmatpush3.bf16.msra.mxu1 %v1846_v41  ;;  %1684 = vmatprep.subr.bf16.mxu0 %v1847_v46  ;;  %v1404_v29 = vcombine.high %v56_v24, %v60_v25  ;;  %v1403_v35 = vcombine.low %v56_v24, %v60_v25  ;;  %v76_v41 = vld [vmem:[%s2451_s0 + $0x1b8] sm:$0xff] }
  0x3f   :  { %1742 = vmatprep.subr.bf16.mxu1 %v1849_v49  ;;  %v1420_v45 = vcombine.high %v72_v40, %v76_v41 }
  0x41   :  { %1685 = vmatpush3.bf16.msra.mxu0 %v1848_v47  ;;  %v1419_v47 = vcombine.low %v72_v40, %v76_v41 }
  0x42   :  { %1743 = vmatpush3.bf16.msra.mxu1 %v1850_v52 }
  0x43   :  { %934 = vmatmul.mubr.bf16.gmra.mxu0 %v1397_v34  ;;  %v1401_v34 = vcombine.low %v55_v22, %v59_v23 }
  0x44   :  { %1023 = vmatmul.mubr.bf16.gmra.mxu1 %v1399_v36  ;;  %941 = vmatprep.mubr.bf16.mxu0 %v1406_v37  ;;  %v1410_v36 = vcombine.high %v63_v30, %v67_v31  ;;  %v1412_v37 = vcombine.high %v64_v32, %v68_v33 }
  0x45   :  { %1030 = vmatprep.mubr.bf16.mxu1 %v1408_v39  ;;  %v75_v39 = vld [vmem:[%s2451_s0 + $0x1b0] sm:$0xff] }
  0x46   :  { %v1418_v44 = vcombine.high %v71_v38, %v75_v39  ;;  %v1417_v46 = vcombine.low %v71_v38, %v75_v39 }
  0x4b   :  { %942 = vmatmul.mubr.bf16.gmra.mxu0 %v1405_v48  ;;  %v1851_v48 = vmov 0.0  }
  0x4c   :  { %1031 = vmatmul.mubr.bf16.gmra.mxu1 %v1407_v50  ;;  %949 = vmatprep.mubr.bf16.mxu0 %v1414_v51  ;;  %19 = vst [vmem:[%s2452_s3] sm:$0x1] %v1851_v48  ;;  %20 = vst [vmem:[%s2453_s4] sm:$0x1] %v1851_v48 }
  0x4d   :  { %1038 = vmatprep.mubr.bf16.mxu1 %v1416_v53 }
  0x53   :  { %950 = vmatmul.mubr.bf16.gmra.mxu0 %v1413_v58 }
  0x54   :  { %1039 = vmatmul.mubr.bf16.gmra.mxu1 %v1415_v59  ;;  %1079 = vmatprep.mubr.bf16.mxu0 %v1370_v60 }
  0x55   :  { %1168 = vmatprep.mubr.bf16.mxu1 %v1372_v61 }
  0x5b   :  { %1080 = vmatmul.mubr.bf16.vlgmr.msra.gmra.mxu0 %v1369_v2 }
  0x5c   :  { %1169 = vmatmul.mubr.bf16.vlgmr.msra.gmra.mxu1 %v1371_v3  ;;  %1087 = vmatprep.mubr.bf16.mxu0 %v1378_v4 }
  0x5d   :  { %1176 = vmatprep.mubr.bf16.mxu1 %v1380_v5 }
  0x63   :  { %1088 = vmatmul.mubr.bf16.gmra.mxu0 %v1377_v10 }
  0x64   :  { %1177 = vmatmul.mubr.bf16.gmra.mxu1 %v1379_v11  ;;  %1095 = vmatprep.mubr.bf16.mxu0 %v1386_v12 }
  0x65   :  { %1184 = vmatprep.mubr.bf16.mxu1 %v1388_v13 }
  0x6b   :  { %1096 = vmatmul.mubr.bf16.gmra.mxu0 %v1385_v18 }
  0x6c   :  { %1185 = vmatmul.mubr.bf16.gmra.mxu1 %v1387_v19  ;;  %1103 = vmatprep.mubr.bf16.mxu0 %v1394_v20 }
  0x6d   :  { %1192 = vmatprep.mubr.bf16.mxu1 %v1396_v21 }
  0x73   :  { %1104 = vmatmul.mubr.bf16.gmra.mxu0 %v1393_v26 }
  0x74   :  { %1193 = vmatmul.mubr.bf16.gmra.mxu1 %v1395_v27  ;;  %1111 = vmatprep.mubr.bf16.mxu0 %v1402_v28 }
  0x75   :  { %1200 = vmatprep.mubr.bf16.mxu1 %v1404_v29 }
  0x7b   :  { %1112 = vmatmul.mubr.bf16.gmra.mxu0 %v1401_v34 }
  0x7c   :  { %1201 = vmatmul.mubr.bf16.gmra.mxu1 %v1403_v35  ;;  %1119 = vmatprep.mubr.bf16.mxu0 %v1410_v36 }
  0x7d   :  { %1208 = vmatprep.mubr.bf16.mxu1 %v1412_v37 }
  0x83   :  { %1120 = vmatmul.mubr.bf16.gmra.mxu0 %v1409_v42 }
  0x84   :  { %1209 = vmatmul.mubr.bf16.gmra.mxu1 %v1411_v43  ;;  %1127 = vmatprep.mubr.bf16.mxu0 %v1418_v44 }
  0x85   :  { %1216 = vmatprep.mubr.bf16.mxu1 %v1420_v45 }
  0x8b   :  { %1128 = vmatmul.mubr.bf16.gmra.mxu0 %v1417_v46 }
  0x8c   :  { %1217 = vmatmul.mubr.bf16.gmra.mxu1 %v1419_v47 }
  0xe3   :  { %v1570_v49 = vpop.f32.mrf.mxu0 }
  0xe4   :  { %v1628_v50 = vpop.f32.mrf.mxu1 }
  0xe5   :  { %v1571_v51 = vpop.f32.mrf.mxu0 }
  0xe6   :  { %v1629_v52 = vpop.f32.mrf.mxu1  ;;  %v1572_v42 = vadd.f32 %v1571_v51, %v1570_v49 }
  0xe7   :  { %v1573_v53 = vpop.f32.mrf.mxu0  ;;  %v1630_v43 = vadd.f32 %v1629_v52, %v1628_v50 }
  0xe8   :  { %v1631_v54 = vpop.f32.mrf.mxu1 }
  0xe9   :  { %v1574_v55 = vpop.f32.mrf.mxu0 }
  0xea   :  { %v1632_v56 = vpop.f32.mrf.mxu1  ;;  %v1575_v46 = vadd.f32 %v1574_v55, %v1573_v53 }
  0xeb   :  { %v2243_v57 = vpop.f32.mrf.mxu0  ;;  %v1633_v47 = vadd.f32 %v1632_v56, %v1631_v54 }
  0xec   :  { %v2245_v58 = vpop.f32.mrf.mxu1 }
  0xed   :  { %v2247_v59 = vpop.f32.mrf.mxu0 }
  0xee   :  { %v2249_v60 = vpop.f32.mrf.mxu1 }
  0xef   :  { %v2251_v61 = vpop.f32.mrf.mxu0  ;;  %v1636_v49 = vadd.f32 %v2249_v60, %v2245_v58 }
  0xf0   :  { %v2253_v62 = vpop.f32.mrf.mxu1 }
  0xf1   :  { %v2255_v63 = vpop.f32.mrf.mxu0 }
  0xf2   :  { %v2257_v0 = vpop.f32.mrf.mxu1  ;;  %v1581_v54 = vadd.f32 %v2255_v63, %v2251_v61 }
  0xf3   :  { %v2259_v1 = vpop.f32.mrf.mxu0  ;;  %v1639_v56 = vadd.f32 %v2257_v0, %v2253_v62 }
  0xf4   :  { %v2261_v2 = vpop.f32.mrf.mxu1 }
  0xf5   :  { %v2263_v3 = vpop.f32.mrf.mxu0 }
  0xf6   :  { %v2265_v4 = vpop.f32.mrf.mxu1  ;;  %v1584_v0 = vadd.f32 %v2263_v3, %v2259_v1 }
  0xf7   :  { %v2267_v5 = vpop.f32.mrf.mxu0 }
  0xf8   :  { %v2269_v6 = vpop.f32.mrf.mxu1 }
  0xf9   :  { %v2271_v7 = vpop.f32.mrf.mxu0 }
  0xfa   :  { %v2273_v8 = vpop.f32.mrf.mxu1 }
  0xfb   :  { %v2275_v9 = vpop.f32.mrf.mxu0 }
  0xfc   :  { %v2277_v10 = vpop.f32.mrf.mxu1 }
  0xfd   :  { %v2279_v11 = vpop.f32.mrf.mxu0 }
  0xfe   :  { %v2281_v12 = vpop.f32.mrf.mxu1 }
  0xff   :  { %v2283_v13 = vpop.f32.mrf.mxu0 }
 0x100   :  { %v2285_v14 = vpop.f32.mrf.mxu1 }
 0x101   :  { %v2287_v15 = vpop.f32.mrf.mxu0 }
 0x102   :  { %v2289_v16 = vpop.f32.mrf.mxu1 }
 0x103   :  { %v2291_v17 = vpop.f32.mrf.mxu0 }
 0x104   :  { %v2293_v18 = vpop.f32.mrf.mxu1 }
 0x105   :  { %v2295_v19 = vpop.f32.mrf.mxu0 }
 0x106   :  { %v2297_v20 = vpop.f32.mrf.mxu1 }
 0x107   :  { %v2299_v21 = vpop.f32.mrf.mxu0 }
 0x108   :  { %v2301_v22 = vpop.f32.mrf.mxu1 }
 0x109   :  { %v2303_v23 = vpop.f32.mrf.mxu0 }
 0x10a   :  { %v2305_v24 = vpop.f32.mrf.mxu1 }
 0x10b   :  { %v2307_v25 = vpop.f32.mrf.mxu0 }
 0x10c   :  { %v2309_v26 = vpop.f32.mrf.mxu1 }
 0x10d   :  { %v2311_v27 = vpop.f32.mrf.mxu0 }
 0x10e   :  { %v2313_v28 = vpop.f32.mrf.mxu1 }
 0x10f   :  { %v2315_v29 = vpop.f32.mrf.mxu0 }
 0x110   :  { %v2317_v30 = vpop.f32.mrf.mxu1 }
 0x111   :  { %2455 = vst [vmem:[#allocation2_spill] sm:$0xff] %v2317_v30  ;;  %v2319_v31 = vpop.f32.mrf.mxu0 }
 0x112   :  { %2456 = vst [vmem:[#allocation3_spill] sm:$0xff] %v2319_v31  ;;  %v2321_v32 = vpop.f32.mrf.mxu1 }
 0x113   :  { %2457 = vst [vmem:[#allocation4_spill] sm:$0xff] %v2321_v32  ;;  %v2323_v33 = vpop.f32.mrf.mxu0 }
 0x114   :  { %2458 = vst [vmem:[#allocation5_spill] sm:$0xff] %v2323_v33  ;;  %v2325_v34 = vpop.f32.mrf.mxu1  ;;  %v993_v33 = vadd.f32 %v1630_v43, %v1572_v42  ;;  %v1587_v42 = vadd.f32 %v2271_v7, %v2267_v5 }
 0x115   :  { %2459 = vst [vmem:[#allocation6_spill] sm:$0xff] %v2325_v34  ;;  %v2327_v35 = vpop.f32.mrf.mxu0 }
 0x116   :  { %2460 = vst [vmem:[#allocation7_spill] sm:$0xff] %v2327_v35  ;;  %v2329_v36 = vpop.f32.mrf.mxu1 }
 0x117   :  { %2461 = vst [vmem:[#allocation8_spill] sm:$0xff] %v2329_v36  ;;  %v2331_v37 = vpop.f32.mrf.mxu0 }
 0x118   :  { %2462 = vst [vmem:[#allocation9_spill] sm:$0xff] %v2331_v37  ;;  %v2333_v38 = vpop.f32.mrf.mxu1  ;;  %v996_v37 = vadd.f32 %v1633_v47, %v1575_v46 }
 0x119   :  { %2463 = vst [vmem:[#allocation10_spill] sm:$0xff] %v2333_v38  ;;  %v2335_v39 = vpop.f32.mrf.mxu0 }
 0x11a   :  { %2464 = vst [vmem:[#allocation11_spill] sm:$0xff] %v2335_v39  ;;  %v2337_v40 = vpop.f32.mrf.mxu1 }
 0x11b   :  { %2465 = vst [vmem:[#allocation12_spill] sm:$0xff] %v2337_v40  ;;  %v1686_v41 = vpop.f32.mrf.mxu0  ;;  %v1578_v40 = vadd.f32 %v2247_v59, %v2243_v57 }
 0x11c   :  { %v1744_v44 = vpop.f32.mrf.mxu1 }
 0x11d   :  { %v1687_v45 = vpop.f32.mrf.mxu0 }
 0x11e   :  { %v1688_v48 = vadd.f32 %v1687_v45, %v1686_v41  ;;  %v1745_v34 = vpop.f32.mrf.mxu1  ;;  %v1001_v41 = vadd.f32 %v1636_v49, %v1578_v40 }
 0x11f   :  { %v1689_v35 = vpop.f32.mrf.mxu0  ;;  %v1746_v50 = vadd.f32 %v1745_v34, %v1744_v44  ;;  %v1004_v34 = vadd.f32 %v1639_v56, %v1581_v54  ;;  %v1645_v44 = vadd.f32 %v2273_v8, %v2269_v6  ;;  %v1590_v8 = vadd.f32 %v2279_v11, %v2275_v9 }
 0x120   :  { %v1747_v36 = vpop.f32.mrf.mxu1  ;;  %v1082_v30 = vadd.f32 %v1688_v48, %v993_v33 }
 0x121   :  { %v1690_v32 = vpop.f32.mrf.mxu0 }
 0x122   :  { %v1691_v38 = vadd.f32 %v1690_v32, %v1689_v35  ;;  %v1748_v31 = vpop.f32.mrf.mxu1  ;;  %v2347_v32 = vadd.f32 %v1746_v50, %v1082_v30  ;;  %v1012_v50 = vadd.f32 %v1645_v44, %v1587_v42  ;;  %v1657_v42 = vadd.f32 %v2305_v24, %v2301_v22 }
 0x123   :  { %v1692_v39 = vpop.f32.mrf.mxu0  ;;  %v1749_v52 = vadd.f32 %v1748_v31, %v1747_v36  ;;  %v1642_v36 = vadd.f32 %v2265_v4, %v2261_v2 }
 0x124   :  { %v1085_v51 = vadd.f32 %v1691_v38, %v996_v37  ;;  %v1750_v53 = vpop.f32.mrf.mxu1 }
 0x125   :  { %v1693_v55 = vpop.f32.mrf.mxu0  ;;  %v1009_v48 = vadd.f32 %v1642_v36, %v1584_v0 }
 0x126   :  { %v2349_v33 = vadd.f32 %v1749_v52, %v1085_v51  ;;  %v1694_v57 = vadd.f32 %v1693_v55, %v1692_v39  ;;  %v1751_v59 = vpop.f32.mrf.mxu1  ;;  %v1648_v52 = vadd.f32 %v2281_v12, %v2277_v10 }
 0x127   :  { %v1695_v35 = vpop.f32.mrf.mxu0  ;;  %v1752_v37 = vadd.f32 %v1751_v59, %v1750_v53 }
 0x128   :  { %v1516_v58 = vpack.c.bf16 %v2349_v33, %v2347_v32  ;;  %v1753_v60 = vpop.f32.mrf.mxu1  ;;  %v1090_v61 = vadd.f32 %v1694_v57, %v1001_v41  ;;  %v1593_v57 = vadd.f32 %v2287_v15, %v2283_v13  ;;  %v1296_v22 = vadd.f32 %v2349_v33, %v2347_v32 }
 0x129   :  { %v1696_v31 = vpop.f32.mrf.mxu0 }
 0x12a   :  { %1517 = vst [vmem:[%s2454_s2] sm:$0xff] %v1516_v58   ;;  %v1697_v62 = vadd.f32 %v1696_v31, %v1695_v35  ;;  %v1754_v63 = vpop.f32.mrf.mxu1  ;;  %v2364_v45 = vadd.f32 %v1752_v37, %v1090_v61  ;;  %v1651_v35 = vadd.f32 %v2289_v16, %v2285_v14  ;;  %v1017_v31 = vadd.f32 %v1648_v52, %v1590_v8 }
 0x12b   :  { %v1698_v30 = vpop.f32.mrf.mxu0  ;;  %v1755_v39 = vadd.f32 %v1754_v63, %v1753_v60  ;;  %v1596_v14 = vadd.f32 %v2295_v19, %v2291_v17  ;;  %v1654_v63 = vadd.f32 %v2297_v20, %v2293_v18  ;;  %v1602_v18 = vadd.f32 %v2311_v27, %v2307_v25 }
 0x12c   :  { %v1093_v38 = vadd.f32 %v1697_v62, %v1004_v34  ;;  %v1756_v40 = vpop.f32.mrf.mxu1  ;;  %v1020_v61 = vadd.f32 %v1651_v35, %v1593_v57  ;;  %v1660_v20 = vadd.f32 %v2313_v28, %v2309_v26  ;;  %v1297_v26 = vadd.f32 %v1296_v22, %v2364_v45  ;;  %v2473_v22 = vld [vmem:[#allocation9_spill] sm:$0xff] }
 0x12d   :  { %v1699_v43 = vpop.f32.mrf.mxu0 }
 0x12e   :  { %v2366_v46 = vadd.f32 %v1755_v39, %v1093_v38  ;;  %v1700_v1 = vadd.f32 %v1699_v43, %v1698_v30  ;;  %v1757_v3 = vpop.f32.mrf.mxu1  ;;  %v1599_v38 = vadd.f32 %v2303_v23, %v2299_v21  ;;  %v1319_v39 = vmul.f32 %v2349_v33, %v2349_v33 }
 0x12f   :  { %v1701_v47 = vpop.f32.mrf.mxu0  ;;  %v1758_v53 = vadd.f32 %v1757_v3, %v1756_v40  ;;  %v1318_v21 = vmul.f32 %v2347_v32, %v2347_v32  ;;  %v1320_v23 = vmul.f32 %v2364_v45, %v2364_v45  ;;  %v1025_v3 = vadd.f32 %v1654_v63, %v1596_v14 }
 0x130   :  { %v1521_v2 = vpack.c.bf16 %v2366_v46, %v2364_v45  ;;  %v1759_v4 = vpop.f32.mrf.mxu1  ;;  %v1098_v5 = vadd.f32 %v1700_v1, %v1009_v48  ;;  %v1321_v25 = vmul.f32 %v2366_v46, %v2366_v46 }
 0x131   :  { %v1702_v49 = vpop.f32.mrf.mxu0  ;;  %v1332_v48 = vadd.f32 %v1319_v39, %v1318_v21 }
 0x132   :  { %1548 = vst [vmem:[%s2454_s2 + $0x8] sm:$0xff] %v1521_v2   ;;  %v1703_v6 = vadd.f32 %v1702_v49, %v1701_v47  ;;  %v1760_v7 = vpop.f32.mrf.mxu1  ;;  %v1187_v41 = vadd.f32 %v1758_v53, %v1098_v5  ;;  %v1028_v2 = vadd.f32 %v1657_v42, %v1599_v38  ;;  %v2466_v53 = vld [vmem:[#allocation3_spill] sm:$0xff]  ;;  %v2472_v38 = vld [vmem:[#allocation8_spill] sm:$0xff] }
 0x133   :  { %v1704_v51 = vpop.f32.mrf.mxu0  ;;  %v1761_v55 = vadd.f32 %v1760_v7, %v1759_v4  ;;  %v1333_v5 = vadd.f32 %v1332_v48, %v1320_v23  ;;  %v1605_v45 = vadd.f32 %v2466_v53, %v2315_v29  ;;  %v2475_v48 = vld [vmem:[#allocation10_spill] sm:$0xff] }
 0x134   :  { %v1101_v54 = vadd.f32 %v1703_v6, %v1012_v50  ;;  %v1762_v56 = vpop.f32.mrf.mxu1  ;;  %v1033_v50 = vadd.f32 %v1660_v20, %v1602_v18  ;;  %v1322_v32 = vmul.f32 %v1187_v41, %v1187_v41  ;;  %v1298_v6 = vadd.f32 %v1297_v26, %v2366_v46 }
 0x135   :  { %v1705_v59 = vpop.f32.mrf.mxu0  ;;  %v1334_v57 = vadd.f32 %v1333_v5, %v1321_v25  ;;  %v2476_v25 = vld [vmem:[#allocation12_spill] sm:$0xff] }
 0x136   :  { %v2381_v58 = vadd.f32 %v1761_v55, %v1101_v54  ;;  %v1706_v60 = vadd.f32 %v1705_v59, %v1704_v51  ;;  %v1763_v9 = vpop.f32.mrf.mxu1  ;;  %v2467_v54 = vld [vmem:[#allocation2_spill] sm:$0xff]  ;;  %v2468_v55 = vld [vmem:[#allocation4_spill] sm:$0xff] }
 0x137   :  { %v1707_v11 = vpop.f32.mrf.mxu0  ;;  %v1764_v0 = vadd.f32 %v1763_v9, %v1762_v56  ;;  %v1663_v56 = vadd.f32 %v2468_v55, %v2467_v54 }
 0x138   :  { %v1526_v10 = vpack.c.bf16 %v2381_v58, %v1187_v41  ;;  %v1765_v12 = vpop.f32.mrf.mxu1  ;;  %v1106_v13 = vadd.f32 %v1706_v60, %v1017_v31  ;;  %v1323_v59 = vmul.f32 %v2381_v58, %v2381_v58  ;;  %v1299_v60 = vadd.f32 %v1298_v6, %v1187_v41 }
 0x139   :  { %v1708_v34 = vpop.f32.mrf.mxu0 }
 0x13a   :  { %1549 = vst [vmem:[%s2454_s2 + $0x10] sm:$0xff] %v1526_v10   ;;  %v1709_v15 = vadd.f32 %v1708_v34, %v1707_v11  ;;  %v1766_v62 = vpop.f32.mrf.mxu1  ;;  %v1195_v43 = vadd.f32 %v1764_v0, %v1106_v13  ;;  %v1335_v10 = vadd.f32 %v1334_v57, %v1322_v32 }
 0x13b   :  { %v1710_v16 = vpop.f32.mrf.mxu0  ;;  %v1767_v36 = vadd.f32 %v1766_v62, %v1765_v12  ;;  %v1036_v62 = vadd.f32 %v1663_v56, %v1605_v45 }
 0x13c   :  { %v1109_v30 = vadd.f32 %v1709_v15, %v1020_v61  ;;  %v1768_v37 = vpop.f32.mrf.mxu1  ;;  %v1324_v12 = vmul.f32 %v1195_v43, %v1195_v43  ;;  %v1300_v61 = vadd.f32 %v1299_v60, %v2381_v58  ;;  %v1336_v14 = vadd.f32 %v1335_v10, %v1323_v59 }
 0x13d   :  { %v1711_v40 = vpop.f32.mrf.mxu0 }
 0x13e   :  { %v1198_v17 = vadd.f32 %v1767_v36, %v1109_v30  ;;  %v1712_v19 = vadd.f32 %v1711_v40, %v1710_v16  ;;  %v1769_v44 = vpop.f32.mrf.mxu1  ;;  %v2469_v30 = vld [vmem:[#allocation5_spill] sm:$0xff]  ;;  %v2470_v36 = vld [vmem:[#allocation7_spill] sm:$0xff]  ;;  %v1301_v40 = vadd.f32 %v1300_v61, %v1195_v43 }
 0x13f   :  { %v1713_v1 = vpop.f32.mrf.mxu0  ;;  %v1770_v7 = vadd.f32 %v1769_v44, %v1768_v37  ;;  %v1608_v41 = vadd.f32 %v2470_v36, %v2469_v30  ;;  %v2471_v37 = vld [vmem:[#allocation6_spill] sm:$0xff] }
 0x140   :  { %v1531_v24 = vpack.c.bf16 %v1198_v17, %v1195_v43  ;;  %v1771_v47 = vpop.f32.mrf.mxu1  ;;  %v1114_v28 = vadd.f32 %v1712_v19, %v1025_v3  ;;  %v1325_v16 = vmul.f32 %v1198_v17, %v1198_v17  ;;  %v1666_v39 = vadd.f32 %v2472_v38, %v2471_v37 }
 0x141   :  { %v1714_v27 = vpop.f32.mrf.mxu0  ;;  %v1337_v19 = vadd.f32 %v1336_v14, %v1324_v12  ;;  %v1302_v21 = vadd.f32 %v1301_v40, %v1198_v17  ;;  %v1669_v43 = vadd.f32 %v2476_v25, %v2475_v48 }
 0x142   :  { %1550 = vst [vmem:[%s2454_s2 + $0x18] sm:$0xff] %v1531_v24   ;;  %v1715_v4 = vadd.f32 %v1714_v27, %v1713_v1  ;;  %v1772_v49 = vpop.f32.mrf.mxu1  ;;  %v1203_v9 = vadd.f32 %v1770_v7, %v1114_v28  ;;  %v2474_v24 = vld [vmem:[#allocation11_spill] sm:$0xff]  ;;  %v1041_v28 = vadd.f32 %v1666_v39, %v1608_v41  ;;  %v1295_v39 = vld [vmem:[%s2452_s3] sm:$0x1] }
 0x143   :  { %v1716_v33 = vpop.f32.mrf.mxu0  ;;  %v1773_v51 = vadd.f32 %v1772_v49, %v1771_v47  ;;  %v1611_v47 = vadd.f32 %v2474_v24, %v2473_v22  ;;  %v1338_v27 = vadd.f32 %v1337_v19, %v1325_v16 }
 0x144   :  { %v1117_v8 = vadd.f32 %v1715_v4, %v1028_v2  ;;  %v1774_v52 = vpop.f32.mrf.mxu1  ;;  %v1326_v44 = vmul.f32 %v1203_v9, %v1203_v9  ;;  %v1303_v4 = vadd.f32 %v1302_v21, %v1203_v9 }
 0x145   :  { %v1717_v35 = vpop.f32.mrf.mxu0  ;;  %v1044_v53 = vadd.f32 %v1669_v43, %v1611_v47 }
 0x146   :  { %v1206_v11 = vadd.f32 %v1773_v51, %v1117_v8  ;;  %v1718_v31 = vadd.f32 %v1717_v35, %v1716_v33  ;;  %v1775_v46 = vpop.f32.mrf.mxu1  ;;  %v1339_v32 = vadd.f32 %v1338_v27, %v1326_v44 }
 0x147   :  { %v1719_v34 = vpop.f32.mrf.mxu0  ;;  %v1776_v63 = vadd.f32 %v1775_v46, %v1774_v52 }
 0x148   :  { %v1536_v13 = vpack.c.bf16 %v1206_v11, %v1203_v9  ;;  %v1122_v29 = vadd.f32 %v1718_v31, %v1033_v50  ;;  %v1777_v15 = vpop.f32.mrf.mxu1  ;;  %v1327_v2 = vmul.f32 %v1206_v11, %v1206_v11  ;;  %v1304_v6 = vadd.f32 %v1303_v4, %v1206_v11 }
 0x149   :  { %v1720_v0 = vpop.f32.mrf.mxu0 }
 0x14a   :  { %1551 = vst [vmem:[%s2454_s2 + $0x20] sm:$0xff] %v1536_v13   ;;  %v1721_v58 = vadd.f32 %v1720_v0, %v1719_v34  ;;  %v1778_v42 = vpop.f32.mrf.mxu1  ;;  %v1211_v18 = vadd.f32 %v1776_v63, %v1122_v29  ;;  %v1340_v45 = vadd.f32 %v1339_v32, %v1327_v2 }
 0x14b   :  { %v1722_v20 = vpop.f32.mrf.mxu0  ;;  %v1779_v1 = vadd.f32 %v1778_v42, %v1777_v15  ;;  %v1317_v42 = vld [vmem:[%s2453_s4] sm:$0x1] }
 0x14c   :  { %v1125_v23 = vadd.f32 %v1721_v58, %v1036_v62  ;;  %v1780_v3 = vpop.f32.mrf.mxu1  ;;  %v1328_v33 = vmul.f32 %v1211_v18, %v1211_v18  ;;  %v1305_v55 = vadd.f32 %v1304_v6, %v1211_v18 }
 0x14d   :  { %v1723_v26 = vpop.f32.mrf.mxu0 }
 0x14e   :  { %v1214_v49 = vadd.f32 %v1779_v1, %v1125_v23  ;;  %v1724_v50 = vadd.f32 %v1723_v26, %v1722_v20  ;;  %v1781_v5 = vpop.f32.mrf.mxu1  ;;  %v1341_v60 = vadd.f32 %v1340_v45, %v1328_v33 }
 0x14f   :  { %v1725_v17 = vpop.f32.mrf.mxu0  ;;  %v1782_v51 = vadd.f32 %v1781_v5, %v1780_v3 }
 0x150   :  { %v1541_v7 = vpack.c.bf16 %v1214_v49, %v1211_v18  ;;  %v1130_v8 = vadd.f32 %v1724_v50, %v1041_v28  ;;  %v1783_v52 = vpop.f32.mrf.mxu1  ;;  %v1329_v56 = vmul.f32 %v1214_v49, %v1214_v49  ;;  %v1306_v9 = vadd.f32 %v1305_v55, %v1214_v49 }
 0x151   :  { %v1726_v54 = vpop.f32.mrf.mxu0 }
 0x152   :  { %1552 = vst [vmem:[%s2454_s2 + $0x28] sm:$0xff] %v1541_v7   ;;  %v1219_v57 = vadd.f32 %v1782_v51, %v1130_v8  ;;  %v1727_v59 = vadd.f32 %v1726_v54, %v1725_v17  ;;  %v1784_v35 = vpop.f32.mrf.mxu1  ;;  %v1342_v10 = vadd.f32 %v1341_v60, %v1329_v56 }
 0x153   :  { %v1785_v46 = vadd.f32 %v1784_v35, %v1783_v52 }
 0x154   :  { %v1330_v31 = vmul.f32 %v1219_v57, %v1219_v57  ;;  %v1133_v11 = vadd.f32 %v1727_v59, %v1044_v53  ;;  %v1307_v12 = vadd.f32 %v1306_v9, %v1219_v57 }
 0x156   :  { %v1222_v34 = vadd.f32 %v1785_v46, %v1133_v11  ;;  %v1343_v61 = vadd.f32 %v1342_v10, %v1330_v31 }
 0x158   :  { %v1546_v13 = vpack.c.bf16 %v1222_v34, %v1219_v57  ;;  %v1308_v29 = vadd.f32 %v1307_v12, %v1222_v34  ;;  %v1331_v15 = vmul.f32 %v1222_v34, %v1222_v34 }
 0x15a   :  { %1553 = vst [vmem:[%s2454_s2 + $0x30] sm:$0xff] %v1546_v13   ;;  %v1309_v62 = vrot.slane %v1308_v29, 4  ;;  %v1344_v14 = vadd.f32 %v1343_v61, %v1331_v15 }
 0x15c   :  { %v1310_v16 = vadd.f32 %v1309_v62, %v1308_v29  ;;  %v1345_v63 = vrot.slane %v1344_v14, 4 }
 0x15e   :  { %v1311_v0 = vrot.slane %v1310_v16, 2  ;;  %v1346_v30 = vadd.f32 %v1345_v63, %v1344_v14 }
 0x160   :  { %v1312_v36 = vadd.f32 %v1311_v0, %v1310_v16  ;;  %v1347_v41 = vrot.slane %v1346_v30, 2 }
 0x162   :  { %v1313_v37 = vrot.slane %v1312_v36, 1  ;;  %v1348_v38 = vadd.f32 %v1347_v41, %v1346_v30 }
 0x164   :  { %v1314_v40 = vadd.f32 %v1313_v37, %v1312_v36  ;;  %v1349_v58 = vrot.slane %v1348_v38, 1 }
 0x166   :  { %v1315_v19 = vadd.f32 %v1314_v40, %v1295_v39  ;;  %v1350_v44 = vadd.f32 %v1349_v58, %v1348_v38 }
 0x168   :  { %1316 = vst [vmem:[%s2452_s3] sm:$0x1] %v1315_v19  ;;  %v1351_v18 = vadd.f32 %v1350_v44, %v1317_v42 }
 0x16a   :  { %1352 = vst [vmem:[%s2453_s4] sm:$0x1] %v1351_v18 }

// kernel: tile.9
= control target key start
LH: loop header
LB: loop body
LE: loop exit
PB: predicated region body
PF: predicated region fallthrough
CT: control target
= control target key end

     0   :  { %s98_s0 = inlined_call_operand.vmem [shape: f32[2,9,256], index: 0, kind: input, shape index: {}]   ;;  %s99_s1 = inlined_call_operand.vmem [shape: f32[18,256], index: 1, kind: output, shape index: {}]  }
   0x1   :  { %v2_v0 = vld [vmem:[%s98_s0] sm:$0xff]   ;;  %v30_v1 = vld [vmem:[%s98_s0 + $0x8] sm:$0xff]   ;;  %v41_v5 = vld [vmem:[%s98_s0 + $0x38] sm:$0x1]  }
   0x2   :  { %v32_v2 = vld [vmem:[%s98_s0 + $0x10] ss:$8 sm:$0x7]   ;;  %3 = vst [vmem:[%s99_s1] sm:$0xff] %v2_v0   ;;  %31 = vst [vmem:[%s99_s1 + $0x8] sm:$0xff] %v30_v1   ;;  %v35_v3 = vld [vmem:[%s98_s0 + $0x21] sm:$0xff]  }
   0x3   :  { %33 = vst [vmem:[%s99_s1 + $0x10] ss:$8 sm:$0x3] %v32_v2   ;;  %34 = vst [vmem:[%s99_s1 + $0xf] sm:$0x4] %v32_v2   ;;  %v38_v4 = vld [vmem:[%s98_s0 + $0x29] sm:$0xff]  }
   0x4   :  { %36 = vst [vmem:[%s99_s1 + $0x12] sm:$0x3f] %v35_v3   ;;  %37 = vst [vmem:[%s99_s1 + $0x4a] ss:$-7 sm:$0xc0] %v35_v3  }
   0x5   :  { %39 = vst [vmem:[%s99_s1 + $0x1a] sm:$0x3f] %v38_v4   ;;  %40 = vst [vmem:[%s99_s1 + $0x52] ss:$-7 sm:$0xc0] %v38_v4  }
   0x6   :  { %42 = vst [vmem:[%s99_s1 + $0x29] sm:$0x1] %v41_v5  }

// kernel: dcdiscriminator_forward.7
= control target key start
LH: loop header
LB: loop body
LE: loop exit
PB: predicated region body
PF: predicated region fallthrough
CT: control target
= control target key end

     0   :  { %vm1479_vm9 = vcmask 261120   ;;  %vm1557_vm10 = vcmask 7168   ;;  %s2605_s1 = inlined_call_operand.vmem [shape: bf16[1152,256], index: 1, kind: input, shape index: {}]   ;;  %s2606_s0 = inlined_call_operand.vmem [shape: bf16[32,1152], index: 0, kind: input, shape index: {}]   ;;  %s2607_s2 = inlined_call_operand.vmem [shape: f32[1,256], index: 2, kind: input, shape index: {}]   ;;  %s2608_s3 = inlined_call_operand.vmem [shape: f32[1,256], index: 3, kind: input, shape index: {}]   ;;  %s2609_s4 = inlined_call_operand.vmem [shape: f32[32,256], index: 4, kind: input, shape index: {}]   ;;  %s2610_s5 = inlined_call_operand.vmem [shape: f32[8,32], index: 5, kind: input, shape index: {}]   ;;  %s2611_s6 = inlined_call_operand.vmem [shape: f32[8,1], index: 6, kind: output, shape index: {}]  }
   0x1   :  { %v1746_v0 = vld [vmem:[%s2605_s1 + $0x74] ss:$8 sps:$4 sm:$0xff]   ;;  %v1750_v2 = vld [vmem:[%s2605_s1 + $0x70] ss:$8 sps:$4 sm:$0xff]   ;;  %v1752_v4 = vld [vmem:[%s2605_s1 + $0x64] ss:$8 sps:$4 sm:$0xff]  }
   0x2   :  { %v1748_v1 = vld [vmem:[%s2605_s1 + $0x174] ss:$8 sps:$4 sm:$0xff]   ;;  %1000 = vmatprep.subr.bf16.mxu0 %v1746_v0  ;;  %v1751_v3 = vld [vmem:[%s2605_s1 + $0x170] ss:$8 sps:$4 sm:$0xff]   ;;  %v1754_v5 = vld [vmem:[%s2605_s1 + $0x164] ss:$8 sps:$4 sm:$0xff]  }
   0x3   :  { %1053 = vmatprep.subr.bf16.mxu1 %v1748_v1  ;;  %1001 = vmatpush1.bf16.msra.mxu0 %v1750_v2  ;;  %v1756_v6 = vld [vmem:[%s2605_s1 + $0x60] ss:$8 sps:$4 sm:$0xff]   ;;  %v1758_v8 = vld [vmem:[%s2605_s1 + $0x54] ss:$8 sps:$4 sm:$0xff]   ;;  %v1762_v10 = vld [vmem:[%s2605_s1 + $0x50] ss:$8 sps:$4 sm:$0xff]  }
   0x4   :  { %1054 = vmatpush1.bf16.msra.mxu1 %v1751_v3  ;;  %1002 = vmatprep.subr.bf16.mxu0 %v1752_v4  ;;  %v1757_v7 = vld [vmem:[%s2605_s1 + $0x160] ss:$8 sps:$4 sm:$0xff]   ;;  %v1760_v9 = vld [vmem:[%s2605_s1 + $0x154] ss:$8 sps:$4 sm:$0xff]   ;;  %v1763_v11 = vld [vmem:[%s2605_s1 + $0x150] ss:$8 sps:$4 sm:$0xff]  }
   0x5   :  { %1055 = vmatprep.subr.bf16.mxu1 %v1754_v5  ;;  %v1764_v12 = vld [vmem:[%s2605_s1 + $0x44] ss:$8 sps:$4 sm:$0xff]   ;;  %v1768_v14 = vld [vmem:[%s2605_s1 + $0x40] ss:$8 sps:$4 sm:$0xff]   ;;  %v1770_v16 = vld [vmem:[%s2605_s1 + $0x34] ss:$8 sps:$4 sm:$0xff]  }
   0x6   :  { %v1766_v13 = vld [vmem:[%s2605_s1 + $0x144] ss:$8 sps:$4 sm:$0xff]   ;;  %v1769_v15 = vld [vmem:[%s2605_s1 + $0x140] ss:$8 sps:$4 sm:$0xff]   ;;  %v1772_v17 = vld [vmem:[%s2605_s1 + $0x134] ss:$8 sps:$4 sm:$0xff]  }
   0x7   :  { %1003 = vmatpush1.bf16.msra.mxu0 %v1756_v6  ;;  %v1774_v18 = vld [vmem:[%s2605_s1 + $0x30] ss:$8 sps:$4 sm:$0xff]   ;;  %v1776_v20 = vld [vmem:[%s2605_s1 + $0x24] ss:$8 sps:$4 sm:$0xff]   ;;  %v1780_v22 = vld [vmem:[%s2605_s1 + $0x20] ss:$8 sps:$4 sm:$0xff]  }
   0x8   :  { %1056 = vmatpush1.bf16.msra.mxu1 %v1757_v7  ;;  %1004 = vmatprep.subr.bf16.mxu0 %v1758_v8  ;;  %v1775_v19 = vld [vmem:[%s2605_s1 + $0x130] ss:$8 sps:$4 sm:$0xff]   ;;  %v1778_v21 = vld [vmem:[%s2605_s1 + $0x124] ss:$8 sps:$4 sm:$0xff]   ;;  %v1781_v23 = vld [vmem:[%s2605_s1 + $0x120] ss:$8 sps:$4 sm:$0xff]  }
   0x9   :  { %1057 = vmatprep.subr.bf16.mxu1 %v1760_v9  ;;  %v1782_v24 = vld [vmem:[%s2605_s1 + $0x14] ss:$8 sps:$4 sm:$0xff]   ;;  %v1786_v26 = vld [vmem:[%s2605_s1 + $0x10] ss:$8 sps:$4 sm:$0xff]   ;;  %v1788_v28 = vld [vmem:[%s2605_s1 + $0x4] ss:$8 sps:$4 sm:$0xff]  }
   0xa   :  { %v1784_v25 = vld [vmem:[%s2605_s1 + $0x114] ss:$8 sps:$4 sm:$0xff]   ;;  %v1787_v27 = vld [vmem:[%s2605_s1 + $0x110] ss:$8 sps:$4 sm:$0xff]   ;;  %v1790_v29 = vld [vmem:[%s2605_s1 + $0x104] ss:$8 sps:$4 sm:$0xff]  }
   0xb   :  { %1005 = vmatpush1.bf16.msra.mxu0 %v1762_v10  ;;  %v1792_v30 = vld [vmem:[%s2605_s1] ss:$8 sps:$4 sm:$0xff]   ;;  %v1794_v32 = vld [vmem:[%s2605_s1 + $0xf4] ss:$8 sps:$4 sm:$0xff]   ;;  %v1798_v34 = vld [vmem:[%s2605_s1 + $0xf0] ss:$8 sps:$4 sm:$0xff]  }
   0xc   :  { %1058 = vmatpush1.bf16.msra.mxu1 %v1763_v11  ;;  %1006 = vmatprep.subr.bf16.mxu0 %v1764_v12  ;;  %v1793_v31 = vld [vmem:[%s2605_s1 + $0x100] ss:$8 sps:$4 sm:$0xff]   ;;  %v1796_v33 = vld [vmem:[%s2605_s1 + $0x1f4] ss:$8 sps:$4 sm:$0xff]   ;;  %v1799_v35 = vld [vmem:[%s2605_s1 + $0x1f0] ss:$8 sps:$4 sm:$0xff]  }
   0xd   :  { %1059 = vmatprep.subr.bf16.mxu1 %v1766_v13  ;;  %v1800_v36 = vld [vmem:[%s2605_s1 + $0xe4] ss:$8 sps:$4 sm:$0xff]   ;;  %v1804_v38 = vld [vmem:[%s2605_s1 + $0xe0] ss:$8 sps:$4 sm:$0xff]   ;;  %v1806_v40 = vld [vmem:[%s2605_s1 + $0xd4] ss:$8 sps:$4 sm:$0xff]  }
   0xe   :  { %v1802_v37 = vld [vmem:[%s2605_s1 + $0x1e4] ss:$8 sps:$4 sm:$0xff]   ;;  %v1805_v39 = vld [vmem:[%s2605_s1 + $0x1e0] ss:$8 sps:$4 sm:$0xff]   ;;  %v1808_v41 = vld [vmem:[%s2605_s1 + $0x1d4] ss:$8 sps:$4 sm:$0xff]  }
   0xf   :  { %1007 = vmatpush1.bf16.msra.mxu0 %v1768_v14  ;;  %v1810_v42 = vld [vmem:[%s2605_s1 + $0xd0] ss:$8 sps:$4 sm:$0xff]   ;;  %v1812_v44 = vld [vmem:[%s2605_s1 + $0xc4] ss:$8 sps:$4 sm:$0xff]   ;;  %v1816_v46 = vld [vmem:[%s2605_s1 + $0xc0] ss:$8 sps:$4 sm:$0xff]  }
  0x10   :  { %1060 = vmatpush1.bf16.msra.mxu1 %v1769_v15  ;;  %1008 = vmatprep.subr.bf16.mxu0 %v1770_v16  ;;  %v1811_v43 = vld [vmem:[%s2605_s1 + $0x1d0] ss:$8 sps:$4 sm:$0xff]   ;;  %v1814_v45 = vld [vmem:[%s2605_s1 + $0x1c4] ss:$8 sps:$4 sm:$0xff]   ;;  %v1817_v47 = vld [vmem:[%s2605_s1 + $0x1c0] ss:$8 sps:$4 sm:$0xff]  }
  0x11   :  { %1061 = vmatprep.subr.bf16.mxu1 %v1772_v17  ;;  %v1818_v48 = vld [vmem:[%s2605_s1 + $0xb4] ss:$8 sps:$4 sm:$0xff]   ;;  %v1844_v49 = vld [vmem:[%s2606_s0 + $0x4] ss:$36 sps:$4 sm:$0xff]   ;;  %v1847_v51 = vld [vmem:[%s2606_s0 + $0xc] ss:$36 sps:$4 sm:$0xff]  }
  0x12   :  { %v1820_v50 = vld [vmem:[%s2605_s1 + $0x1b4] ss:$8 sps:$4 sm:$0xff]   ;;  %1032 = vmatprep.mubr.bf16.mxu0 %v1844_v49  ;;  %v1822_v52 = vld [vmem:[%s2605_s1 + $0xb0] ss:$8 sps:$4 sm:$0xff]   ;;  %1085 = vmatprep.mubr.bf16.mxu1 %v1847_v51  ;;  %v1824_v54 = vld [vmem:[%s2605_s1 + $0xa4] ss:$8 sps:$4 sm:$0xff]  }
  0x13   :  { %1009 = vmatpush1.bf16.msra.mxu0 %v1774_v18  ;;  %v1823_v53 = vld [vmem:[%s2605_s1 + $0x1b0] ss:$8 sps:$4 sm:$0xff]   ;;  %v1826_v55 = vld [vmem:[%s2605_s1 + $0x1a4] ss:$8 sps:$4 sm:$0xff]   ;;  %v1828_v56 = vld [vmem:[%s2605_s1 + $0xa0] ss:$8 sps:$4 sm:$0xff]  }
  0x14   :  { %1062 = vmatpush1.bf16.msra.mxu1 %v1775_v19  ;;  %1010 = vmatprep.subr.bf16.mxu0 %v1776_v20  ;;  %v1829_v57 = vld [vmem:[%s2605_s1 + $0x1a0] ss:$8 sps:$4 sm:$0xff]   ;;  %v1830_v58 = vld [vmem:[%s2605_s1 + $0x94] ss:$8 sps:$4 sm:$0xff]   ;;  %v1834_v60 = vld [vmem:[%s2605_s1 + $0x90] ss:$8 sps:$4 sm:$0xff]  }
  0x15   :  { %1063 = vmatprep.subr.bf16.mxu1 %v1778_v21  ;;  %v1832_v59 = vld [vmem:[%s2605_s1 + $0x194] ss:$8 sps:$4 sm:$0xff]   ;;  %v1835_v61 = vld [vmem:[%s2605_s1 + $0x190] ss:$8 sps:$4 sm:$0xff]   ;;  %v1836_v62 = vld [vmem:[%s2605_s1 + $0x84] ss:$8 sps:$4 sm:$0xff]  }
  0x16   :  { %v1838_v63 = vld [vmem:[%s2605_s1 + $0x184] ss:$8 sps:$4 sm:$0xff]   ;;  %v1840_v0 = vld [vmem:[%s2605_s1 + $0x80] ss:$8 sps:$4 sm:$0xff]   ;;  %v1850_v2 = vld [vmem:[%s2605_s1 + $0x274] ss:$8 sps:$4 sm:$0xff]  }
  0x17   :  { %1011 = vmatpush1.bf16.msra.mxu0 %v1780_v22  ;;  %v1841_v1 = vld [vmem:[%s2605_s1 + $0x180] ss:$8 sps:$4 sm:$0xff]   ;;  %v1853_v3 = vld [vmem:[%s2605_s1 + $0x374] ss:$8 sps:$4 sm:$0xff]   ;;  %v1848_v6 = vld [vmem:[%s2605_s1 + $0x270] ss:$8 sps:$4 sm:$0xff]  }
  0x18   :  { %1064 = vmatpush1.bf16.msra.mxu1 %v1781_v23  ;;  %1012 = vmatprep.subr.bf16.mxu0 %v1782_v24  ;;  %v1842_v4 = vld [vmem:[%s2606_s0] ss:$36 sps:$4 sm:$0xff]   ;;  %v1845_v5 = vld [vmem:[%s2606_s0 + $0x8] ss:$36 sps:$4 sm:$0xff]   ;;  %v1851_v7 = vld [vmem:[%s2605_s1 + $0x370] ss:$8 sps:$4 sm:$0xff]  }
  0x19   :  { %1065 = vmatprep.subr.bf16.mxu1 %v1784_v25  ;;  %v1856_v8 = vld [vmem:[%s2605_s1 + $0x264] ss:$8 sps:$4 sm:$0xff]   ;;  %v1854_v10 = vld [vmem:[%s2605_s1 + $0x260] ss:$8 sps:$4 sm:$0xff]   ;;  %v1862_v12 = vld [vmem:[%s2605_s1 + $0x254] ss:$8 sps:$4 sm:$0xff]  }
  0x1a   :  { %v1859_v9 = vld [vmem:[%s2605_s1 + $0x364] ss:$8 sps:$4 sm:$0xff]   ;;  %v1857_v11 = vld [vmem:[%s2605_s1 + $0x360] ss:$8 sps:$4 sm:$0xff]   ;;  %v1865_v13 = vld [vmem:[%s2605_s1 + $0x354] ss:$8 sps:$4 sm:$0xff]  }
  0x1b   :  { %1013 = vmatpush1.bf16.msra.mxu0 %v1786_v26  ;;  %v1860_v14 = vld [vmem:[%s2605_s1 + $0x250] ss:$8 sps:$4 sm:$0xff]   ;;  %v1868_v16 = vld [vmem:[%s2605_s1 + $0x244] ss:$8 sps:$4 sm:$0xff]   ;;  %v1866_v18 = vld [vmem:[%s2605_s1 + $0x240] ss:$8 sps:$4 sm:$0xff]  }
  0x1c   :  { %1066 = vmatpush1.bf16.msra.mxu1 %v1787_v27  ;;  %1014 = vmatprep.subr.bf16.mxu0 %v1788_v28  ;;  %v1863_v15 = vld [vmem:[%s2605_s1 + $0x350] ss:$8 sps:$4 sm:$0xff]   ;;  %v1871_v17 = vld [vmem:[%s2605_s1 + $0x344] ss:$8 sps:$4 sm:$0xff]   ;;  %v1869_v19 = vld [vmem:[%s2605_s1 + $0x340] ss:$8 sps:$4 sm:$0xff]  }
  0x1d   :  { %1067 = vmatprep.subr.bf16.mxu1 %v1790_v29  ;;  %v1874_v20 = vld [vmem:[%s2605_s1 + $0x234] ss:$8 sps:$4 sm:$0xff]   ;;  %v1872_v22 = vld [vmem:[%s2605_s1 + $0x230] ss:$8 sps:$4 sm:$0xff]   ;;  %v1880_v24 = vld [vmem:[%s2605_s1 + $0x224] ss:$8 sps:$4 sm:$0xff]  }
  0x1e   :  { %v1877_v21 = vld [vmem:[%s2605_s1 + $0x334] ss:$8 sps:$4 sm:$0xff]   ;;  %v1875_v23 = vld [vmem:[%s2605_s1 + $0x330] ss:$8 sps:$4 sm:$0xff]   ;;  %v1883_v25 = vld [vmem:[%s2605_s1 + $0x324] ss:$8 sps:$4 sm:$0xff]  }
  0x1f   :  { %1015 = vmatpush1.bf16.msra.mxu0 %v1792_v30  ;;  %v1926_v26 = vld [vmem:[%s2606_s0 + $0x4c] ss:$36 sps:$4 sm:$0xff]   ;;  %v1928_v27 = vld [vmem:[%s2606_s0 + $0x54] ss:$36 sps:$4 sm:$0xff]   ;;  %v1878_v30 = vld [vmem:[%s2605_s1 + $0x220] ss:$8 sps:$4 sm:$0xff]  }
  0x20   :  { %1068 = vmatpush1.bf16.msra.mxu1 %v1793_v31  ;;  %1016 = vmatprep.subr.bf16.mxu0 %v1794_v32  ;;  %v1930_v28 = vld [vmem:[%s2606_s0 + $0x48] ss:$36 sps:$4 sm:$0xff]   ;;  %v1931_v29 = vld [vmem:[%s2606_s0 + $0x50] ss:$36 sps:$4 sm:$0xff]  }
  0x21   :  { %1069 = vmatprep.subr.bf16.mxu1 %v1796_v33  ;;  %v1881_v31 = vld [vmem:[%s2605_s1 + $0x320] ss:$8 sps:$4 sm:$0xff]   ;;  %v1886_v32 = vld [vmem:[%s2605_s1 + $0x214] ss:$8 sps:$4 sm:$0xff]  }
  0x22   :  { %v1889_v33 = vld [vmem:[%s2605_s1 + $0x314] ss:$8 sps:$4 sm:$0xff]   ;;  %v1905_v49 = vld [vmem:[%s2605_s1 + $0x3e0] ss:$8 sps:$4 sm:$0xff]  }
  0x23   :  { %1017 = vmatpush2.bf16.msra.mxu0 %v1798_v34  ;;  %v1884_v34 = vld [vmem:[%s2605_s1 + $0x210] ss:$8 sps:$4 sm:$0xff]   ;;  %v1913_v51 = vld [vmem:[%s2605_s1 + $0x3d4] ss:$8 sps:$4 sm:$0xff]  }
  0x24   :  { %1070 = vmatpush2.bf16.msra.mxu1 %v1799_v35  ;;  %1018 = vmatprep.subr.bf16.mxu0 %v1800_v36  ;;  %v1887_v35 = vld [vmem:[%s2605_s1 + $0x310] ss:$8 sps:$4 sm:$0xff]   ;;  %v1892_v36 = vld [vmem:[%s2605_s1 + $0x204] ss:$8 sps:$4 sm:$0xff]  }
  0x25   :  { %1071 = vmatprep.subr.bf16.mxu1 %v1802_v37  ;;  %v1895_v37 = vld [vmem:[%s2605_s1 + $0x304] ss:$8 sps:$4 sm:$0xff]  }
  0x27   :  { %1019 = vmatpush2.bf16.msra.mxu0 %v1804_v38  ;;  %v1890_v38 = vld [vmem:[%s2605_s1 + $0x200] ss:$8 sps:$4 sm:$0xff]  }
  0x28   :  { %1072 = vmatpush2.bf16.msra.mxu1 %v1805_v39  ;;  %1020 = vmatprep.subr.bf16.mxu0 %v1806_v40  ;;  %v1893_v39 = vld [vmem:[%s2605_s1 + $0x300] ss:$8 sps:$4 sm:$0xff]   ;;  %v1898_v40 = vld [vmem:[%s2605_s1 + $0x2f4] ss:$8 sps:$4 sm:$0xff]  }
  0x29   :  { %1073 = vmatprep.subr.bf16.mxu1 %v1808_v41  ;;  %v1952_v41 = vld [vmem:[%s2606_s0 + $0x14] ss:$36 sps:$4 sm:$0xff]  }
  0x2b   :  { %1021 = vmatpush2.bf16.msra.mxu0 %v1810_v42  ;;  %v1901_v42 = vld [vmem:[%s2605_s1 + $0x3f4] ss:$8 sps:$4 sm:$0xff]  }
  0x2c   :  { %1074 = vmatpush2.bf16.msra.mxu1 %v1811_v43  ;;  %1022 = vmatprep.subr.bf16.mxu0 %v1812_v44  ;;  %v1955_v43 = vld [vmem:[%s2606_s0 + $0x1c] ss:$36 sps:$4 sm:$0xff]   ;;  %v1896_v44 = vld [vmem:[%s2605_s1 + $0x2f0] ss:$8 sps:$4 sm:$0xff]  }
  0x2d   :  { %1075 = vmatprep.subr.bf16.mxu1 %v1814_v45  ;;  %v1899_v45 = vld [vmem:[%s2605_s1 + $0x3f0] ss:$8 sps:$4 sm:$0xff]  }
  0x2f   :  { %1023 = vmatpush2.bf16.msra.mxu0 %v1816_v46  ;;  %v1904_v46 = vld [vmem:[%s2605_s1 + $0x2e4] ss:$8 sps:$4 sm:$0xff]  }
  0x30   :  { %1076 = vmatpush2.bf16.msra.mxu1 %v1817_v47  ;;  %1024 = vmatprep.subr.bf16.mxu0 %v1818_v48  ;;  %v1907_v47 = vld [vmem:[%s2605_s1 + $0x3e4] ss:$8 sps:$4 sm:$0xff]   ;;  %v1902_v48 = vld [vmem:[%s2605_s1 + $0x2e0] ss:$8 sps:$4 sm:$0xff]  }
  0x31   :  { %1077 = vmatprep.subr.bf16.mxu1 %v1820_v50  ;;  %v1910_v50 = vld [vmem:[%s2605_s1 + $0x2d4] ss:$8 sps:$4 sm:$0xff]  }
  0x33   :  { %1025 = vmatpush2.bf16.msra.mxu0 %v1822_v52  ;;  %v1908_v52 = vld [vmem:[%s2605_s1 + $0x2d0] ss:$8 sps:$4 sm:$0xff]  }
  0x34   :  { %1078 = vmatpush2.bf16.msra.mxu1 %v1823_v53  ;;  %1026 = vmatprep.subr.bf16.mxu0 %v1824_v54  ;;  %v1911_v53 = vld [vmem:[%s2605_s1 + $0x3d0] ss:$8 sps:$4 sm:$0xff]   ;;  %v1916_v54 = vld [vmem:[%s2605_s1 + $0x2c4] ss:$8 sps:$4 sm:$0xff]  }
  0x35   :  { %1079 = vmatprep.subr.bf16.mxu1 %v1826_v55  ;;  %v1919_v55 = vld [vmem:[%s2605_s1 + $0x3c4] ss:$8 sps:$4 sm:$0xff]  }
  0x37   :  { %1027 = vmatpush2.bf16.msra.mxu0 %v1828_v56  ;;  %v1914_v56 = vld [vmem:[%s2605_s1 + $0x2c0] ss:$8 sps:$4 sm:$0xff]  }
  0x38   :  { %1080 = vmatpush2.bf16.msra.mxu1 %v1829_v57  ;;  %1028 = vmatprep.subr.bf16.mxu0 %v1830_v58  ;;  %v1917_v57 = vld [vmem:[%s2605_s1 + $0x3c0] ss:$8 sps:$4 sm:$0xff]   ;;  %v1922_v58 = vld [vmem:[%s2605_s1 + $0x2b4] ss:$8 sps:$4 sm:$0xff]  }
  0x39   :  { %1081 = vmatprep.subr.bf16.mxu1 %v1832_v59  ;;  %v1925_v59 = vld [vmem:[%s2605_s1 + $0x3b4] ss:$8 sps:$4 sm:$0xff]  }
  0x3b   :  { %1029 = vmatpush2.bf16.msra.mxu0 %v1834_v60  ;;  %v1920_v60 = vld [vmem:[%s2605_s1 + $0x2b0] ss:$8 sps:$4 sm:$0xff]  }
  0x3c   :  { %1082 = vmatpush2.bf16.msra.mxu1 %v1835_v61  ;;  %1030 = vmatprep.subr.bf16.mxu0 %v1836_v62  ;;  %v1923_v61 = vld [vmem:[%s2605_s1 + $0x3b0] ss:$8 sps:$4 sm:$0xff]   ;;  %v1934_v62 = vld [vmem:[%s2605_s1 + $0x2a4] ss:$8 sps:$4 sm:$0xff]  }
  0x3d   :  { %1083 = vmatprep.subr.bf16.mxu1 %v1838_v63  ;;  %v1937_v63 = vld [vmem:[%s2605_s1 + $0x3a4] ss:$8 sps:$4 sm:$0xff]  }
  0x3f   :  { %1031 = vmatpush2.bf16.msra.mxu0 %v1840_v0  ;;  %v1932_v0 = vld [vmem:[%s2605_s1 + $0x2a0] ss:$8 sps:$4 sm:$0xff]  }
  0x40   :  { %1084 = vmatpush2.bf16.msra.mxu1 %v1841_v1  ;;  %1106 = vmatprep.subr.bf16.mxu0 %v1850_v2  ;;  %v1935_v1 = vld [vmem:[%s2605_s1 + $0x3a0] ss:$8 sps:$4 sm:$0xff]   ;;  %v1940_v2 = vld [vmem:[%s2605_s1 + $0x294] ss:$8 sps:$4 sm:$0xff]  }
  0x41   :  { %1159 = vmatprep.subr.bf16.mxu1 %v1853_v3  ;;  %v1943_v3 = vld [vmem:[%s2605_s1 + $0x394] ss:$8 sps:$4 sm:$0xff]  }
  0x42   :  { %1033 = vmatmul.mubr.bf16.vlgmr.msra.gmra.mxu0 %v1842_v4  ;;  %v1938_v4 = vld [vmem:[%s2605_s1 + $0x290] ss:$8 sps:$4 sm:$0xff]  }
  0x43   :  { %1086 = vmatmul.mubr.bf16.vlgmr.msra.gmra.mxu1 %v1845_v5  ;;  %1107 = vmatpush1.bf16.msra.mxu0 %v1848_v6  ;;  %v1941_v5 = vld [vmem:[%s2605_s1 + $0x390] ss:$8 sps:$4 sm:$0xff]   ;;  %v1946_v6 = vld [vmem:[%s2605_s1 + $0x284] ss:$8 sps:$4 sm:$0xff]  }
  0x44   :  { %1160 = vmatpush1.bf16.msra.mxu1 %v1851_v7  ;;  %1108 = vmatprep.subr.bf16.mxu0 %v1856_v8  ;;  %v1949_v7 = vld [vmem:[%s2605_s1 + $0x384] ss:$8 sps:$4 sm:$0xff]   ;;  %v1944_v8 = vld [vmem:[%s2605_s1 + $0x280] ss:$8 sps:$4 sm:$0xff]  }
  0x45   :  { %1161 = vmatprep.subr.bf16.mxu1 %v1859_v9  ;;  %1042 = vmatprep.mubr.bf16.mxu0 %v1926_v26  ;;  %v1947_v9 = vld [vmem:[%s2605_s1 + $0x380] ss:$8 sps:$4 sm:$0xff]   ;;  %v1974_v26 = vld [vmem:[%s2605_s1 + $0x430] ss:$8 sps:$4 sm:$0xff]  }
  0x46   :  { %1095 = vmatprep.mubr.bf16.mxu1 %v1928_v27  ;;  %v1979_v27 = vld [vmem:[%s2605_s1 + $0x424] ss:$8 sps:$4 sm:$0xff]  }
  0x47   :  { %1109 = vmatpush1.bf16.msra.mxu0 %v1854_v10  ;;  %v1958_v10 = vld [vmem:[%s2605_s1 + $0x474] ss:$8 sps:$4 sm:$0xff]  }
  0x48   :  { %1162 = vmatpush1.bf16.msra.mxu1 %v1857_v11  ;;  %1110 = vmatprep.subr.bf16.mxu0 %v1862_v12  ;;  %v1950_v11 = vld [vmem:[%s2606_s0 + $0x10] ss:$36 sps:$4 sm:$0xff]   ;;  %v1953_v12 = vld [vmem:[%s2606_s0 + $0x18] ss:$36 sps:$4 sm:$0xff]  }
  0x49   :  { %1163 = vmatprep.subr.bf16.mxu1 %v1865_v13  ;;  %v1956_v13 = vld [vmem:[%s2605_s1 + $0x470] ss:$8 sps:$4 sm:$0xff]  }
  0x4a   :  { %1043 = vmatmul.mubr.bf16.gmra.mxu0 %v1930_v28  ;;  %v1977_v28 = vld [vmem:[%s2605_s1 + $0x420] ss:$8 sps:$4 sm:$0xff]  }
  0x4b   :  { %1111 = vmatpush1.bf16.msra.mxu0 %v1860_v14  ;;  %1096 = vmatmul.mubr.bf16.gmra.mxu1 %v1931_v29  ;;  %v1961_v14 = vld [vmem:[%s2605_s1 + $0x464] ss:$8 sps:$4 sm:$0xff]   ;;  %v1982_v29 = vld [vmem:[%s2605_s1 + $0x414] ss:$8 sps:$4 sm:$0xff]  }
  0x4c   :  { %1164 = vmatpush1.bf16.msra.mxu1 %v1863_v15  ;;  %1112 = vmatprep.subr.bf16.mxu0 %v1868_v16  ;;  %v1962_v15 = vld [vmem:[%s2606_s0 + $0x5c] ss:$36 sps:$4 sm:$0xff]   ;;  %v1968_v16 = vld [vmem:[%s2606_s0 + $0x64] ss:$36 sps:$4 sm:$0xff]  }
  0x4d   :  { %1165 = vmatprep.subr.bf16.mxu1 %v1871_v17  ;;  %1138 = vmatprep.mubr.bf16.mxu0 %v1952_v41  ;;  %v1959_v17 = vld [vmem:[%s2605_s1 + $0x460] ss:$8 sps:$4 sm:$0xff]  }
  0x4e   :  { %1191 = vmatprep.mubr.bf16.mxu1 %v1955_v43 }
  0x4f   :  { %1113 = vmatpush1.bf16.msra.mxu0 %v1866_v18  ;;  %v1967_v18 = vld [vmem:[%s2605_s1 + $0x454] ss:$8 sps:$4 sm:$0xff]  }
  0x50   :  { %1166 = vmatpush1.bf16.msra.mxu1 %v1869_v19  ;;  %1114 = vmatprep.subr.bf16.mxu0 %v1874_v20  ;;  %v1964_v19 = vld [vmem:[%s2606_s0 + $0x58] ss:$36 sps:$4 sm:$0xff]   ;;  %v1970_v20 = vld [vmem:[%s2606_s0 + $0x60] ss:$36 sps:$4 sm:$0xff]  }
  0x51   :  { %1167 = vmatprep.subr.bf16.mxu1 %v1877_v21  ;;  %v1965_v21 = vld [vmem:[%s2605_s1 + $0x450] ss:$8 sps:$4 sm:$0xff]  }
  0x53   :  { %1115 = vmatpush1.bf16.msra.mxu0 %v1872_v22  ;;  %v1973_v22 = vld [vmem:[%s2605_s1 + $0x444] ss:$8 sps:$4 sm:$0xff]  }
  0x54   :  { %1168 = vmatpush1.bf16.msra.mxu1 %v1875_v23  ;;  %1116 = vmatprep.subr.bf16.mxu0 %v1880_v24  ;;  %v1971_v23 = vld [vmem:[%s2605_s1 + $0x440] ss:$8 sps:$4 sm:$0xff]   ;;  %v1976_v24 = vld [vmem:[%s2605_s1 + $0x434] ss:$8 sps:$4 sm:$0xff]  }
  0x55   :  { %1169 = vmatprep.subr.bf16.mxu1 %v1883_v25  ;;  %v1992_v25 = vmov 0  }
  0x57   :  { %1117 = vmatpush1.bf16.msra.mxu0 %v1878_v30  ;;  %v1980_v30 = vld [vmem:[%s2605_s1 + $0x410] ss:$8 sps:$4 sm:$0xff]  }
  0x58   :  { %1170 = vmatpush1.bf16.msra.mxu1 %v1881_v31  ;;  %1118 = vmatprep.subr.bf16.mxu0 %v1886_v32  ;;  %v1985_v31 = vld [vmem:[%s2605_s1 + $0x404] ss:$8 sps:$4 sm:$0xff]   ;;  %v1983_v32 = vld [vmem:[%s2605_s1 + $0x400] ss:$8 sps:$4 sm:$0xff]  }
  0x59   :  { %1171 = vmatprep.subr.bf16.mxu1 %v1889_v33  ;;  %v1986_v33 = vld [vmem:[%s2606_s0 + $0x20] ss:$36 sps:$4 sm:$0xff]  }
  0x5b   :  { %1119 = vmatpush1.bf16.msra.mxu0 %v1884_v34  ;;  %v1987_v34 = vld [vmem:[%s2606_s0 + $0x68] ss:$36 sps:$4 sm:$0xff]  }
  0x5c   :  { %1172 = vmatpush1.bf16.msra.mxu1 %v1887_v35  ;;  %1120 = vmatprep.subr.bf16.mxu0 %v1892_v36  ;;  %v1993_v35 = vmov 0.0  }
  0x5d   :  { %1173 = vmatprep.subr.bf16.mxu1 %v1895_v37 }
  0x5f   :  { %1121 = vmatpush1.bf16.msra.mxu0 %v1890_v38 }
  0x60   :  { %1174 = vmatpush1.bf16.msra.mxu1 %v1893_v39  ;;  %1122 = vmatprep.subr.bf16.mxu0 %v1898_v40 }
  0x61   :  { %1175 = vmatprep.subr.bf16.mxu1 %v1901_v42 }
  0x63   :  { %1123 = vmatpush2.bf16.msra.mxu0 %v1896_v44 }
  0x64   :  { %1176 = vmatpush2.bf16.msra.mxu1 %v1899_v45  ;;  %1124 = vmatprep.subr.bf16.mxu0 %v1904_v46 }
  0x65   :  { %1177 = vmatprep.subr.bf16.mxu1 %v1907_v47 }
  0x67   :  { %1125 = vmatpush2.bf16.msra.mxu0 %v1902_v48 }
  0x68   :  { %1178 = vmatpush2.bf16.msra.mxu1 %v1905_v49  ;;  %1126 = vmatprep.subr.bf16.mxu0 %v1910_v50 }
  0x69   :  { %1179 = vmatprep.subr.bf16.mxu1 %v1913_v51 }
  0x6b   :  { %1127 = vmatpush2.bf16.msra.mxu0 %v1908_v52 }
  0x6c   :  { %1180 = vmatpush2.bf16.msra.mxu1 %v1911_v53  ;;  %1128 = vmatprep.subr.bf16.mxu0 %v1916_v54 }
  0x6d   :  { %1181 = vmatprep.subr.bf16.mxu1 %v1919_v55 }
  0x6f   :  { %1129 = vmatpush2.bf16.msra.mxu0 %v1914_v56 }
  0x70   :  { %1182 = vmatpush2.bf16.msra.mxu1 %v1917_v57  ;;  %1130 = vmatprep.subr.bf16.mxu0 %v1922_v58 }
  0x71   :  { %1183 = vmatprep.subr.bf16.mxu1 %v1925_v59 }
  0x73   :  { %1131 = vmatpush2.bf16.msra.mxu0 %v1920_v60 }
  0x74   :  { %1184 = vmatpush2.bf16.msra.mxu1 %v1923_v61  ;;  %1132 = vmatprep.subr.bf16.mxu0 %v1934_v62  ;;  %v1265_v62 = vlaneseq }
  0x75   :  { %1185 = vmatprep.subr.bf16.mxu1 %v1937_v63 }
  0x77   :  { %1133 = vmatpush2.bf16.msra.mxu0 %v1932_v0 }
  0x78   :  { %1186 = vmatpush2.bf16.msra.mxu1 %v1935_v1  ;;  %1134 = vmatprep.subr.bf16.mxu0 %v1940_v2  ;;  %v2516_v1 = vshrl.u32 %v1265_v62, 7 }
  0x79   :  { %1187 = vmatprep.subr.bf16.mxu1 %v1943_v3 }
  0x7b   :  { %1135 = vmatpush2.bf16.msra.mxu0 %v1938_v4 }
  0x7c   :  { %1188 = vmatpush2.bf16.msra.mxu1 %v1941_v5  ;;  %1136 = vmatprep.subr.bf16.mxu0 %v1946_v6  ;;  %v1268_v5 = vadd.s32 16, %v2516_v1 }
  0x7d   :  { %1189 = vmatprep.subr.bf16.mxu1 %v1949_v7 }
  0x7e   :  { %vm1272_vm0 = vcmp.lt.s32.totalorder %v1268_v5, 18 }
  0x7f   :  { %1137 = vmatpush2.bf16.msra.mxu0 %v1944_v8 }
  0x80   :  { %1190 = vmatpush2.bf16.msra.mxu1 %v1947_v9  ;;  %1212 = vmatprep.subr.bf16.mxu0 %v1958_v10 }
  0x81   :  { %1727 = vmatprep.subr.bf16.mxu1 %v1958_v10 }
  0x82   :  { %1139 = vmatmul.mubr.bf16.vlgmr.msra.gmra.mxu0 %v1950_v11 }
  0x83   :  { %1192 = vmatmul.mubr.bf16.vlgmr.msra.gmra.mxu1 %v1953_v12  ;;  %1213 = vmatpush1.bf16.msra.mxu0 %v1956_v13 }
  0x84   :  { %1735 = vmatpush1.bf16.msra.mxu1 %v1956_v13  ;;  %1214 = vmatprep.subr.bf16.mxu0 %v1961_v14 }
  0x85   :  { %1728 = vmatprep.subr.bf16.mxu1 %v1961_v14  ;;  %1148 = vmatprep.mubr.bf16.mxu0 %v1962_v15 }
  0x86   :  { %1201 = vmatprep.mubr.bf16.mxu1 %v1968_v16 }
  0x87   :  { %1215 = vmatpush1.bf16.msra.mxu0 %v1959_v17 }
  0x88   :  { %1736 = vmatpush1.bf16.msra.mxu1 %v1959_v17  ;;  %1216 = vmatprep.subr.bf16.mxu0 %v1967_v18 }
  0x89   :  { %1729 = vmatprep.subr.bf16.mxu1 %v1967_v18 }
  0x8a   :  { %1149 = vmatmul.mubr.bf16.gmra.mxu0 %v1964_v19 }
  0x8b   :  { %1202 = vmatmul.mubr.bf16.gmra.mxu1 %v1970_v20  ;;  %1217 = vmatpush1.bf16.msra.mxu0 %v1965_v21 }
  0x8c   :  { %1737 = vmatpush1.bf16.msra.mxu1 %v1965_v21  ;;  %1218 = vmatprep.subr.bf16.mxu0 %v1973_v22 }
  0x8d   :  { %1730 = vmatprep.subr.bf16.mxu1 %v1973_v22  ;;  %1244 = vmatprep.mubr.bf16.mxu0 %v1992_v25 }
  0x8e   :  { %1254 = vmatprep.mubr.bf16.mxu1 %v1992_v25 }
  0x8f   :  { %1219 = vmatpush1.bf16.msra.mxu0 %v1971_v23 }
  0x90   :  { %1738 = vmatpush1.bf16.msra.mxu1 %v1971_v23  ;;  %1220 = vmatprep.subr.bf16.mxu0 %v1976_v24 }
  0x91   :  { %1731 = vmatprep.subr.bf16.mxu1 %v1976_v24 }
  0x93   :  { %1221 = vmatpush1.bf16.msra.mxu0 %v1974_v26 }
  0x94   :  { %1739 = vmatpush1.bf16.msra.mxu1 %v1974_v26  ;;  %1222 = vmatprep.subr.bf16.mxu0 %v1979_v27 }
  0x95   :  { %1732 = vmatprep.subr.bf16.mxu1 %v1979_v27  ;;  %v1725_v27 = vsel %vm1272_vm0, 1.0, %v1993_v35 }
  0x97   :  { %1223 = vmatpush1.bf16.msra.mxu0 %v1977_v28 }
  0x98   :  { %1740 = vmatpush1.bf16.msra.mxu1 %v1977_v28  ;;  %1224 = vmatprep.subr.bf16.mxu0 %v1982_v29 }
  0x99   :  { %1733 = vmatprep.subr.bf16.mxu1 %v1982_v29 }
  0x9b   :  { %1225 = vmatpush1.bf16.msra.mxu0 %v1980_v30 }
  0x9c   :  { %1741 = vmatpush1.bf16.msra.mxu1 %v1980_v30  ;;  %1226 = vmatprep.subr.bf16.mxu0 %v1985_v31 }
  0x9d   :  { %1734 = vmatprep.subr.bf16.mxu1 %v1985_v31 }
  0x9f   :  { %1227 = vmatpush1.bf16.msra.mxu0 %v1983_v32 }
  0xa0   :  { %1742 = vmatpush1.bf16.msra.mxu1 %v1983_v32 }
  0xa2   :  { %1245 = vmatmul.mubr.bf16.vlgmr.msra.gmra.mxu0 %v1986_v33 }
  0xa3   :  { %1255 = vmatmul.mubr.bf16.vlgmr.msra.gmra.mxu1 %v1987_v34 }
  0xa4   :  { %1547 = vmatprep.mubr.f32.mxu1 %v1993_v35 }
 0x102   :  { %v1034_v36 = vpop.f32.mrf.mxu0 }
 0x103   :  { %v1087_v37 = vpop.f32.mrf.mxu1 }
 0x104   :  { %v1036_v38 = vpop.f32.mrf.mxu0  ;;  %v1088_v7 = vadd.f32 %v1087_v37, %v1034_v36 }
 0x105   :  { %v1089_v39 = vpop.f32.mrf.mxu1 }
 0x106   :  { %v1038_v40 = vpop.f32.mrf.mxu0  ;;  %v1090_v12 = vadd.f32 %v1089_v39, %v1036_v38 }
 0x107   :  { %v1091_v41 = vpop.f32.mrf.mxu1 }
 0x108   :  { %v1040_v42 = vpop.f32.mrf.mxu0  ;;  %v1092_v8 = vadd.f32 %v1091_v41, %v1038_v40 }
 0x109   :  { %v1093_v44 = vpop.f32.mrf.mxu1 }
 0x10a   :  { %v1044_v43 = vpop.f32.mrf.mxu0  ;;  %v1094_v13 = vadd.f32 %v1093_v44, %v1040_v42 }
 0x10b   :  { %v1097_v45 = vpop.f32.mrf.mxu1 }
 0x10c   :  { %v1046_v46 = vpop.f32.mrf.mxu0  ;;  %v1098_v3 = vadd.f32 %v1097_v45, %v1044_v43 }
 0x10d   :  { %v1099_v47 = vpop.f32.mrf.mxu1 }
 0x10e   :  { %v1048_v48 = vpop.f32.mrf.mxu0  ;;  %v1100_v9 = vadd.f32 %v1099_v47, %v1046_v46 }
 0x10f   :  { %v1101_v49 = vpop.f32.mrf.mxu1 }
 0x110   :  { %v1050_v50 = vpop.f32.mrf.mxu0  ;;  %v1102_v10 = vadd.f32 %v1101_v49, %v1048_v48 }
 0x111   :  { %v1103_v52 = vpop.f32.mrf.mxu1 }
 0x112   :  { %v1104_v14 = vadd.f32 %v1103_v52, %v1050_v50 }
 0x142   :  { %v1140_v51 = vpop.f32.mrf.mxu0 }
 0x143   :  { %v1193_v53 = vpop.f32.mrf.mxu1  ;;  %v1141_v16 = vadd.f32 %v1140_v51, %v1088_v7 }
 0x144   :  { %v1142_v54 = vpop.f32.mrf.mxu0 }
 0x145   :  { %v1195_v55 = vpop.f32.mrf.mxu1  ;;  %v1143_v20 = vadd.f32 %v1142_v54, %v1090_v12  ;;  %v1194_v30 = vadd.f32 %v1193_v53, %v1141_v16 }
 0x146   :  { %v1144_v56 = vpop.f32.mrf.mxu0 }
 0x147   :  { %v1197_v57 = vpop.f32.mrf.mxu1  ;;  %v1145_v17 = vadd.f32 %v1144_v56, %v1092_v8  ;;  %v1196_v34 = vadd.f32 %v1195_v55, %v1143_v20 }
 0x148   :  { %v1146_v58 = vpop.f32.mrf.mxu0 }
 0x149   :  { %v1199_v59 = vpop.f32.mrf.mxu1  ;;  %v1147_v21 = vadd.f32 %v1146_v58, %v1094_v13  ;;  %v1198_v31 = vadd.f32 %v1197_v57, %v1145_v17 }
 0x14a   :  { %v1150_v60 = vpop.f32.mrf.mxu0 }
 0x14b   :  { %v1203_v61 = vpop.f32.mrf.mxu1  ;;  %v1151_v6 = vadd.f32 %v1150_v60, %v1098_v3  ;;  %v1200_v36 = vadd.f32 %v1199_v59, %v1147_v21 }
 0x14c   :  { %v1152_v63 = vpop.f32.mrf.mxu0 }
 0x14d   :  { %v1205_v0 = vpop.f32.mrf.mxu1  ;;  %v1153_v18 = vadd.f32 %v1152_v63, %v1100_v9  ;;  %v1204_v22 = vadd.f32 %v1203_v61, %v1151_v6 }
 0x14e   :  { %v1154_v2 = vpop.f32.mrf.mxu0 }
 0x14f   :  { %v1207_v4 = vpop.f32.mrf.mxu1  ;;  %v1155_v19 = vadd.f32 %v1154_v2, %v1102_v10  ;;  %v1206_v32 = vadd.f32 %v1205_v0, %v1153_v18 }
 0x150   :  { %v1156_v11 = vpop.f32.mrf.mxu0 }
 0x151   :  { %v1209_v15 = vpop.f32.mrf.mxu1  ;;  %v1157_v23 = vadd.f32 %v1156_v11, %v1104_v14  ;;  %v1208_v33 = vadd.f32 %v1207_v4, %v1155_v19 }
 0x153   :  { %v1210_v37 = vadd.f32 %v1209_v15, %v1157_v23 }
 0x162   :  { %v1246_v24 = vpop.f32.mrf.mxu0 }
 0x163   :  { %v1256_v25 = vpop.f32.mrf.mxu1  ;;  %v2521_v40 = vadd.f32 %v1246_v24, %v1194_v30 }
 0x164   :  { %v2519_v26 = vadd.f32 %v1256_v25, %v1204_v22  ;;  %v1248_v28 = vpop.f32.mrf.mxu0 }
 0x165   :  { %v1258_v29 = vpop.f32.mrf.mxu1  ;;  %v2530_v46 = vadd.f32 %v1248_v28, %v1196_v34 }
 0x166   :  { %v1250_v38 = vpop.f32.mrf.mxu0  ;;  %v2523_v41 = vadd.f32 %v1258_v29, %v1206_v32  ;;  %v1286_v35 = vmul.f32 %v1725_v27, %v2519_v26 }
 0x167   :  { %v1260_v39 = vpop.f32.mrf.mxu1  ;;  %v2525_v42 = vadd.f32 %v1250_v38, %v1198_v31 }
 0x168   :  { %v2527_v43 = vadd.f32 %v1260_v39, %v1208_v33  ;;  %v1252_v44 = vpop.f32.mrf.mxu0  ;;  %v1287_v50 = vmul.f32 %v1725_v27, %v2523_v41 }
 0x169   :  { %v1262_v45 = vpop.f32.mrf.mxu1  ;;  %v1290_v47 = vadd.f32 %v2525_v42, %v2521_v40  ;;  %v2534_v48 = vadd.f32 %v1252_v44, %v1200_v36 }
 0x16a   :  { %v2536_v49 = vadd.f32 %v1262_v45, %v1210_v37  ;;  %v1288_v52 = vmul.f32 0.0, %v2527_v43 }
 0x16b   :  { %v1291_v51 = vadd.f32 %v1290_v47, %v1286_v35  ;;  %v1299_v53 = vadd.f32 %v2534_v48, %v2530_v46 }
 0x16c   :  { %v1289_v56 = vmul.f32 0.0, %v2536_v49 }
 0x16d   :  { %v1292_v54 = vadd.f32 %v1291_v51, %v1288_v52  ;;  %v1300_v55 = vadd.f32 %v1299_v53, %v1287_v50 }
 0x16f   :  { %v1293_v57 = vrot.slane %v1292_v54, 4  ;;  %v1301_v58 = vadd.f32 %v1300_v55, %v1289_v56 }
 0x171   :  { %v1294_v59 = vadd.f32 %v1293_v57, %v1292_v54  ;;  %v1302_v60 = vrot.slane %v1301_v58, 4 }
 0x173   :  { %v1295_v61 = vrot.slane %v1294_v59, 2  ;;  %v1303_v62 = vadd.f32 %v1302_v60, %v1301_v58 }
 0x175   :  { %v1296_v63 = vadd.f32 %v1295_v61, %v1294_v59  ;;  %v1304_v0 = vrot.slane %v1303_v62, 2  ;;  %v1994_v59 = vmov 1966171168  }
 0x176   :  { %v1363_v60 = vunpack.c.l.s4 %v1994_v59 }
 0x177   :  { %v1297_v2 = vrot.slane %v1296_v63, 1  ;;  %v1305_v3 = vadd.f32 %v1304_v0, %v1303_v62 }
 0x178   :  { %v1364_v61 = vunpack.c.0.s8 %v1363_v60 }
 0x179   :  { %v1298_v4 = vadd.f32 %v1297_v2, %v1296_v63  ;;  %v1306_v5 = vrot.slane %v1305_v3, 1 }
 0x17a   :  { %v1367_v63 = vsub.s32 %v1364_v61, %v2516_v1 }
 0x17b   :  { %v2543_v6 = vmul.f32 0.055555556, %v1298_v4  ;;  %v1307_v7 = vadd.f32 %v1306_v5, %v1305_v3  ;;  %v1354_v4 = vld [vmem:[%s2607_s2] sm:$0x3] }
 0x17d   :  { %v1310_v8 = vsub.f32 %v2521_v40, %v2543_v6  ;;  %v1312_v9 = vsub.f32 %v2525_v42, %v2543_v6  ;;  %v1314_v10 = vsub.f32 %v2519_v26, %v2543_v6  ;;  %v1316_v11 = vsub.f32 %v2527_v43, %v2543_v6 }
 0x17e   :  { %v1309_v12 = vmul.f32 0.055555556, %v1307_v7  ;;  %v1382_v7 = vsub.s32 0, %v2516_v1 }
 0x17f   :  { %v1322_v13 = vmul.f32 %v1725_v27, %v1314_v10  ;;  %v1324_v14 = vmul.f32 0.0, %v1316_v11  ;;  %v1326_v15 = vmul.f32 %v1310_v8, %v1310_v8  ;;  %v1328_v16 = vmul.f32 %v1312_v9, %v1312_v9 }
 0x180   :  { %v1311_v17 = vsub.f32 %v2530_v46, %v1309_v12  ;;  %v1313_v18 = vsub.f32 %v2534_v48, %v1309_v12  ;;  %v1315_v19 = vsub.f32 %v2523_v41, %v1309_v12  ;;  %v1317_v20 = vsub.f32 %v2536_v49, %v1309_v12 }
 0x181   :  { %v1330_v21 = vmul.f32 %v1322_v13, %v1322_v13  ;;  %v1334_v22 = vadd.f32 %v1328_v16, %v1326_v15  ;;  %v1332_v29 = vmul.f32 %v1324_v14, %v1324_v14  ;;  %v1386_v8 = vsub.s32 1, %v2516_v1 }
 0x182   :  { %v1323_v23 = vmul.f32 %v1725_v27, %v1315_v19  ;;  %v1325_v24 = vmul.f32 0.0, %v1317_v20  ;;  %v1327_v25 = vmul.f32 %v1311_v17, %v1311_v17  ;;  %v1329_v28 = vmul.f32 %v1313_v18, %v1313_v18  ;;  %v1378_v17 = vld [vmem:[%s2608_s3] sm:$0x3] }
 0x183   :  { %v1335_v30 = vadd.f32 %v1334_v22, %v1330_v21 }
 0x184   :  { %v1331_v31 = vmul.f32 %v1323_v23, %v1323_v23  ;;  %v1343_v32 = vadd.f32 %v1329_v28, %v1327_v25  ;;  %v1333_v34 = vmul.f32 %v1325_v24, %v1325_v24 }
 0x185   :  { %v1336_v33 = vadd.f32 %v1335_v30, %v1332_v29 }
 0x186   :  { %v1344_v36 = vadd.f32 %v1343_v32, %v1331_v31 }
 0x187   :  { %v1337_v37 = vrot.slane %v1336_v33, 4 }
 0x188   :  { %v1345_v38 = vadd.f32 %v1344_v36, %v1333_v34 }
 0x189   :  { %v1338_v39 = vadd.f32 %v1337_v37, %v1336_v33 }
 0x18a   :  { %v1346_v35 = vrot.slane %v1345_v38, 4 }
 0x18b   :  { %v1339_v44 = vrot.slane %v1338_v39, 2 }
 0x18c   :  { %v1347_v45 = vadd.f32 %v1346_v35, %v1345_v38  ;;  %v1467_v38 = vld [vmem:[%s2609_s4 + $0x28] sm:$0xff] }
 0x18d   :  { %v1340_v47 = vadd.f32 %v1339_v44, %v1338_v39 }
 0x18e   :  { %v1348_v50 = vrot.slane %v1347_v45, 2 }
 0x18f   :  { %v1341_v51 = vrot.slane %v1340_v47, 1 }
 0x190   :  { %v1349_v27 = vadd.f32 %v1348_v50, %v1347_v45  ;;  %v1466_v50 = vld [vmem:[%s2609_s4 + $0x20] sm:$0xff] }
 0x191   :  { %v1342_v52 = vadd.f32 %v1341_v51, %v1340_v47 }
 0x192   :  { %v1350_v53 = vrot.slane %v1349_v27, 1 }
 0x193   :  { %v1352_v54 = vmul.f32 0.055555556, %v1342_v52 }
 0x194   :  { %v1351_v55 = vadd.f32 %v1350_v53, %v1349_v27  ;;  %v1465_v27 = vld [vmem:[%s2609_s4 + $0x18] sm:$0xff] }
 0x195   :  { %v1355_v56 = vadd.f32 1e-05, %v1352_v54  ;;  %v1464_v54 = vld [vmem:[%s2609_s4 + $0x10] sm:$0xff] }
 0x196   :  { %v1353_v57 = vmul.f32 0.055555556, %v1351_v55 }
 0x197   :  { %1988 = vrsqrt.f32 %v1355_v56 }
 0x198   :  { %v1356_v58 = vadd.f32 1e-05, %v1353_v57  ;;  %v1463_v57 = vld [vmem:[%s2609_s4 + $0x8] sm:$0xff] }
 0x19a   :  { %1990 = vrsqrt.f32 %v1356_v58 }
 0x1a4   :  { %v1989_v62 = vpop.eup %1988 }
 0x1a7   :  { %v1991_v0 = vpop.eup %1990 }
 0x1a8   :  { %v1361_v2 = vcombine.low %v1989_v62, %v1991_v0  ;;  %v1462_v62 = vld [vmem:[%s2609_s4] sm:$0xff] }
 0x1aa   :  { %v1368_v3 = vrot.slane %v1361_v2, %v1367_v63 }
 0x1ac   :  { %v1375_v5 = vrot.slane %v1368_v3, %v1367_v63 }
 0x1ae   :  { %v1377_v9 = vmul.f32 %v1375_v5, %v1354_v4  ;;  %v1478_v4 = vld [vmem:[%s2610_s5] sm:$0xff] }
 0x1b0   :  { %v1383_v10 = vrot.slane %v1377_v9, %v1382_v7  ;;  %v1387_v11 = vrot.slane %v1377_v9, %v1386_v8 }
 0x1b2   :  { %v1390_v13 = vmul.f32 %v1383_v10, %v2543_v6  ;;  %v1391_v14 = vmul.f32 %v1387_v11, %v1309_v12  ;;  %v1418_v20 = vmul.f32 %v1387_v11, %v2536_v49  ;;  %v1417_v21 = vmul.f32 %v1383_v10, %v2527_v43  ;;  %v1469_v43 = vld [vmem:[%s2609_s4 + $0x38] sm:$0xff] }
 0x1b3   :  { %v1416_v23 = vmul.f32 %v1387_v11, %v2523_v41  ;;  %v1415_v24 = vmul.f32 %v1383_v10, %v2519_v26  ;;  %v1414_v6 = vmul.f32 %v1387_v11, %v2534_v48  ;;  %v1413_v12 = vmul.f32 %v1383_v10, %v2525_v42  ;;  %v1468_v26 = vld [vmem:[%s2609_s4 + $0x30] sm:$0xff] }
 0x1b4   :  { %v1394_v15 = vcombine.low %v1390_v13, %v1391_v14  ;;  %v1412_v25 = vmul.f32 %v1387_v11, %v2530_v46  ;;  %v1411_v28 = vmul.f32 %v1383_v10, %v2521_v40 }
 0x1b6   :  { %v1401_v16 = vrot.slane %v1394_v15, %v1367_v63 }
 0x1b8   :  { %v1408_v18 = vrot.slane %v1401_v16, %v1367_v63 }
 0x1ba   :  { %v1410_v19 = vsub.f32 %v1378_v17, %v1408_v18 }
 0x1bc   :  { %v1423_v22 = vrot.slane %v1410_v19, %v1382_v7  ;;  %v1427_v1 = vrot.slane %v1410_v19, %v1386_v8 }
 0x1be   :  { %v1437_v29 = vadd.f32 %v1427_v1, %v1418_v20  ;;  %v1436_v30 = vadd.f32 %v1423_v22, %v1417_v21  ;;  %v1435_v31 = vadd.f32 %v1427_v1, %v1416_v23  ;;  %v1434_v49 = vadd.f32 %v1423_v22, %v1415_v24 }
 0x1bf   :  { %v1433_v41 = vadd.f32 %v1427_v1, %v1414_v6  ;;  %v1432_v48 = vadd.f32 %v1423_v22, %v1413_v12  ;;  %v1431_v32 = vadd.f32 %v1427_v1, %v1412_v25  ;;  %v1430_v42 = vadd.f32 %v1423_v22, %v1411_v28 }
 0x1c0   :  { %vm1445_vm1 = vcmp.ge.f32.partialorder %v1437_v29, 0.0  ;;  %v1453_v46 = vmul.f32 0.2, %v1437_v29  ;;  %vm1444_vm2 = vcmp.ge.f32.partialorder %v1436_v30, 0.0  ;;  %v1452_v40 = vmul.f32 0.2, %v1436_v30 }
 0x1c1   :  { %vm1443_vm3 = vcmp.ge.f32.partialorder %v1435_v31, 0.0  ;;  %v1451_v33 = vmul.f32 0.2, %v1435_v31  ;;  %vm1442_vm4 = vcmp.ge.f32.partialorder %v1434_v49, 0.0  ;;  %v1450_v34 = vmul.f32 0.2, %v1434_v49 }
 0x1c2   :  { %v1461_v36 = vsel %vm1445_vm1, %v1437_v29, %v1453_v46  ;;  %v1460_v37 = vsel %vm1444_vm2, %v1436_v30, %v1452_v40  ;;  %vm1441_vm5 = vcmp.ge.f32.partialorder %v1433_v41, 0.0  ;;  %v1449_v39 = vmul.f32 0.2, %v1433_v41 }
 0x1c3   :  { %v1477_v35 = vmul.f32 %v1469_v43, %v1461_v36  ;;  %v1476_v44 = vmul.f32 %v1468_v26, %v1460_v37  ;;  %v1459_v45 = vsel %vm1443_vm3, %v1435_v31, %v1451_v33  ;;  %v1458_v47 = vsel %vm1442_vm4, %v1434_v49, %v1450_v34 }
 0x1c4   :  { %v1457_v51 = vsel %vm1441_vm5, %v1433_v41, %v1449_v39  ;;  %vm1440_vm6 = vcmp.ge.f32.partialorder %v1432_v48, 0.0  ;;  %v1475_v52 = vmul.f32 %v1467_v38, %v1459_v45  ;;  %v1448_v53 = vmul.f32 0.2, %v1432_v48 }
 0x1c5   :  { %1507 = vmatprep.subr.mxu1 %v1477_v35  ;;  %vm1439_vm7 = vcmp.ge.f32.partialorder %v1431_v32, 0.0  ;;  %v1447_v55 = vmul.f32 0.2, %v1431_v32  ;;  %v1474_v56 = vmul.f32 %v1466_v50, %v1458_v47  ;;  %vm1438_vm8 = vcmp.ge.f32.partialorder %v1430_v42, 0.0 }
 0x1c6   :  { %1508 = vmatpush1.msra.mxu1 %v1476_v44  ;;  %v1446_v58 = vmul.f32 0.2, %v1430_v42  ;;  %v1473_v59 = vmul.f32 %v1465_v27, %v1457_v51  ;;  %v1456_v60 = vsel %vm1440_vm6, %v1432_v48, %v1448_v53 }
 0x1c7   :  { %1509 = vmatprep.subr.mxu1 %v1475_v52  ;;  %v1455_v61 = vsel %vm1439_vm7, %v1431_v32, %v1447_v55  ;;  %v1472_v63 = vmul.f32 %v1464_v54, %v1456_v60 }
 0x1c8   :  { %1510 = vmatpush1.msra.mxu1 %v1474_v56  ;;  %v1454_v0 = vsel %vm1438_vm8, %v1430_v42, %v1446_v58  ;;  %v1471_v2 = vmul.f32 %v1463_v57, %v1455_v61 }
 0x1c9   :  { %1511 = vmatprep.subr.mxu1 %v1473_v59  ;;  %v1470_v3 = vmul.f32 %v1462_v62, %v1454_v0 }
 0x1ca   :  { %1512 = vmatpush1.msra.mxu1 %v1472_v63 }
 0x1cb   :  { %1513 = vmatprep.subr.mxu1 %v1471_v2 }
 0x1cc   :  { %1514 = vmatpush1.msra.mxu1 %v1470_v3 }
 0x1cd   :  { %1726 = vmatmul.mubr.msk.f32.vlgmr.msra.gmra.mxu1 %vm1479_vm9, %v1478_v4 }
 0x28d   :  { %v1549_v5 = vpop.f32.mrf.mxu1 }
 0x28f   :  { %v1551_v7 = vpop.f32.mrf.mxu1 }
 0x290   :  { %v1554_v8 = vadd.f32 %v1551_v7, %v1549_v5 }
 0x292   :  { %1555 = vadd.xlane.f32.xlu0 %v1554_v8 }
 0x31b   :  { %v1556_v9 = vpop.xlane.xlu0 %1555 }
 0x31c   :  { %1558 = vst.msk [vmem:[%s2611_s6] sm:$0xff] %vm1557_vm10, %v1556_v9 }

</bundles_post_ra>
